<compile_context>
chip_gen: v7x
topology: tpu7x:2x2x1
jax: 0.10.0
libtpu: 0.0.40
codegen_flags: <defaults>
</compile_context>

<pallas_src>
import functools

import jax
import jax.numpy as jnp
import numpy as np
from jax.experimental import pallas as pl
from jax.experimental.pallas import tpu as pltpu


# ----------------------------- Pallas kernel --------------------------------
def _causal_conv3d_kernel(*refs, KT, KH, KW, H, W, C_in):
    """One (b, t) output plane: in-VMEM im2col + a single MXU matmul."""
    x_refs = refs[:KT]                      # KT halo slices, each (1,1,Hp,Wp,C_in)
    w_ref, b_ref = refs[KT], refs[KT + 1]   # (KT*KH*KW*C_in, C_out), (1, C_out)
    o_ref = refs[KT + 2]                    # (1, 1, H*W, C_out)
    a_ref = refs[KT + 3]                    # VMEM scratch (H, W, KT*KH*KW*C_in) f32

    # In-VMEM im2col: 27 shifted windows -> lane-dense LHS.  All on-chip,
    # no extra HBM traffic.
    k = 0
    for kt in range(KT):
        slab = x_refs[kt][0, 0].astype(jnp.float32)        # (Hp, Wp, C_in)
        for kh in range(KH):
            for kw in range(KW):
                a_ref[:, :, k * C_in:(k + 1) * C_in] = (
                    slab[kh:kh + H, kw:kw + W, :])          # (H, W, C_in)
                k += 1

    # Single big matmul: K = 27*C_in (lane-dense) instead of 27 K=C_in matmuls.
    a = a_ref[...].reshape(H * W, KT * KH * KW * C_in).astype(jnp.bfloat16)
    acc = jnp.dot(a, w_ref[...], preferred_element_type=jnp.float32)
    o_ref[0, 0] = (acc + b_ref[...]).astype(o_ref.dtype)


def causal_conv3d_pallas(x, weight, bias):
    """CausalConv3d forward.

    x: (B, C_in, T, H, W)  ->  channels-last output (B, T, H, W, C_out).
    """
    B, C_in, T, H, W = x.shape
    C_out, c_in_w, KT, KH, KW = weight.shape
    assert c_in_w == C_in
    time_pad, h_pad, w_pad = KT - 1, KH // 2, KW // 2
    Hp, Wp = H + 2 * h_pad, W + 2 * w_pad
    n_taps = KT * KH * KW

    # Channels-last + causal pad (single HBM pass), cast to bf16 to halve the
    # HBM read traffic; the MXU is bf16-native on v5e/v6e/v7x.
    # TODO(synk): accept channels-last input to drop this transpose entirely.
    x_cl = jnp.transpose(x, (0, 2, 3, 4, 1))
    x_p = jnp.pad(
        x_cl, ((0, 0), (time_pad, 0), (h_pad, h_pad), (w_pad, w_pad), (0, 0))
    ).astype(jnp.bfloat16)

    # Tap-major, channels-last weight: (KT*KH*KW*C_in, C_out).
    w_flat = jnp.transpose(weight, (2, 3, 4, 1, 0)).reshape(n_taps * C_in, C_out)
    w_flat = w_flat.astype(jnp.bfloat16)
    b2 = bias.reshape(1, C_out).astype(jnp.float32)

    # One grid step per (batch, output-time).  The KT overlapping time slices
    # of the padded input are expressed as KT BlockSpecs into the same array
    # (block size 1 along time -> block index == element index == t + kt).
    halo_specs = [
        pl.BlockSpec((1, 1, Hp, Wp, C_in),
                     lambda b, t, kt=kt: (b, t + kt, 0, 0, 0))
        for kt in range(KT)
    ]

    kernel = functools.partial(
        _causal_conv3d_kernel, KT=KT, KH=KH, KW=KW, H=H, W=W, C_in=C_in)

    out = pl.pallas_call(
        kernel,
        out_shape=jax.ShapeDtypeStruct((B, T, H * W, C_out), x.dtype),
        grid_spec=pltpu.PrefetchScalarGridSpec(
            num_scalar_prefetch=0,
            grid=(B, T),
            in_specs=halo_specs + [
                pl.BlockSpec((n_taps * C_in, C_out), lambda b, t: (0, 0)),
                pl.BlockSpec((1, C_out), lambda b, t: (0, 0)),
            ],
            out_specs=pl.BlockSpec((1, 1, H * W, C_out),
                                   lambda b, t: (b, t, 0, 0)),
            scratch_shapes=[pltpu.VMEM((H, W, n_taps * C_in), jnp.float32)],
        ),
        compiler_params=pltpu.CompilerParams(
            dimension_semantics=("parallel", "parallel")),
    )(*([x_p] * KT), w_flat, b2)

    # (B, T, H*W, C_out) -> (B, T, H, W, C_out): free metadata reshape.
    # TODO(synk): regroup the kernel store to a 128+-lane-dense layout and fold
    # depth_to_space into the output index_map to remove the remaining
    # post-kernel HBM passes.
    return out.reshape(B, T, H, W, C_out)


# ----------------------------- JAX glue --------------------------------------
def depth_to_space(x, t_stride, filters, space_scaling_factor=2):
    # x: (B, T, H, W, C) channels-last (matches the PyTorch 5-D branch)
    b, t, h, w, _ = x.shape
    s = space_scaling_factor
    x = x.reshape(b, t, h, w, t_stride, s, s, filters)
    x = jnp.transpose(x, (0, 1, 4, 2, 5, 3, 6, 7))
    return x.reshape(b, t * t_stride, h * s, w * s, filters)


def depth_to_space_upsampler(x, weight, bias, t_stride, output_filters,
                             space_scaling_factor=2):
    """Forward of DepthToSpaceUpsampler.  x: (B, C_in, T, H, W)."""
    out = causal_conv3d_pallas(x, weight, bias)    # (B, T, H, W, C_out), channels-last
    out = depth_to_space(out, t_stride, output_filters, space_scaling_factor)
    return jnp.transpose(out, (0, 4, 1, 2, 3))     # b c t h w


# ----------------------------- reference (for checking) ----------------------
def _conv_ref(x, weight, bias):
    KT, KH, KW = weight.shape[2:]
    x_p = jnp.pad(
        x, ((0, 0), (0, 0), (KT - 1, 0), (KH // 2, KH // 2), (KW // 2, KW // 2))
    )
    out = jax.lax.conv_general_dilated(
        x_p, weight, window_strides=(1, 1, 1), padding="VALID",
        dimension_numbers=("NCDHW", "OIDHW", "NCDHW"),
    )
    return out + bias[None, :, None, None, None]


def _upsampler_ref(x, weight, bias, t_stride, output_filters, s=2):
    out = _conv_ref(x, weight, bias)
    out = jnp.transpose(out, (0, 2, 3, 4, 1))
    out = depth_to_space(out, t_stride, output_filters, s)
    return jnp.transpose(out, (0, 4, 1, 2, 3))


# ----------------------------- main ------------------------------------------
if __name__ == "__main__":
    B, C_IN, T, H, W = 2, 4, 4, 8, 8
    T_STRIDE, S, OUT_FILTERS = 2, 2, 4
    C_OUT = T_STRIDE * S * S * OUT_FILTERS  # 32, required by depth_to_space

    key = jax.random.PRNGKey(0)
    kx, kw, kb = jax.random.split(key, 3)

    x = jax.random.normal(kx, (B, C_IN, T, H, W), dtype=jnp.float32)

    # Deterministic Conv3d-style init (kaiming-uniform-like bounds).
    fan_in = C_IN * 3 * 3 * 3
    bound = 1.0 / np.sqrt(fan_in)
    weight = jax.random.uniform(kw, (C_OUT, C_IN, 3, 3, 3),
                                dtype=jnp.float32, minval=-bound, maxval=bound)
    bias = jax.random.uniform(kb, (C_OUT,),
                              dtype=jnp.float32, minval=-bound, maxval=bound)

    out = depth_to_space_upsampler(x, weight, bias, T_STRIDE, OUT_FILTERS, S)
    out = jax.block_until_ready(out)

    expected_shape = (B, OUT_FILTERS, T * T_STRIDE, H * S, W * S)
    assert out.shape == expected_shape, (out.shape, expected_shape)

    ref = jax.block_until_ready(
        _upsampler_ref(x, weight, bias, T_STRIDE, OUT_FILTERS, S))
    np.testing.assert_allclose(np.asarray(out), np.asarray(ref),
                               rtol=2e-2, atol=2e-2)

    print("KERNEL_OK")
</pallas_src>

<mosaic_0001>
module attributes {stable_mosaic.version = 11 : i64} {
  func.func @_causal_conv3d_kernel(%arg0: i32, %arg1: i32, %arg2: memref<1x1x10x10x4xbf16, #tpu.memory_space<vmem>>, %arg3: memref<1x1x10x10x4xbf16, #tpu.memory_space<vmem>>, %arg4: memref<1x1x10x10x4xbf16, #tpu.memory_space<vmem>>, %arg5: memref<108x32xbf16, #tpu.memory_space<vmem>>, %arg6: memref<1x32xf32, #tpu.memory_space<vmem>>, %arg7: memref<1x1x64x32xf32, #tpu.memory_space<vmem>>, %arg8: memref<8x8x108xf32, #tpu.memory_space<vmem>>) attributes {dimension_semantics = [#tpu.dimension_semantics<parallel>, #tpu.dimension_semantics<parallel>], iteration_bounds = array<i64: 2, 4>, scalar_prefetch = 0 : i64, scratch_operands = 1 : i64, tpu.core_type = #tpu.core_type<tc>, window_params = [{transform_indices = @transform_0, window_bounds = array<i64: 1, 1, 10, 10, 4>}, {transform_indices = @transform_1, window_bounds = array<i64: 1, 1, 10, 10, 4>}, {transform_indices = @transform_2, window_bounds = array<i64: 1, 1, 10, 10, 4>}, {pipeline_mode = #tpu.pipeline_mode<synchronous>, transform_indices = @transform_3, window_bounds = array<i64: 108, 32>}, {pipeline_mode = #tpu.pipeline_mode<synchronous>, transform_indices = @transform_4, window_bounds = array<i64: 1, 32>}, {transform_indices = @transform_5, window_bounds = array<i64: 1, 1, 64, 32>}]} {
    %c0 = arith.constant 0 : index
    %c0_0 = arith.constant 0 : index
    %c0_1 = arith.constant 0 : index
    %c0_2 = arith.constant 0 : index
    %c0_3 = arith.constant 0 : index
    %0 = vector.load %arg2[%c0, %c0_0, %c0_1, %c0_2, %c0_3] : memref<1x1x10x10x4xbf16, #tpu.memory_space<vmem>>, vector<1x1x10x10x4xbf16>
    %1 = vector.shape_cast %0 : vector<1x1x10x10x4xbf16> to vector<10x10x4xbf16>
    %2 = arith.extf %1 : vector<10x10x4xbf16> to vector<10x10x4xf32>
    %3 = vector.extract_strided_slice %2 {offsets = [0, 0, 0], sizes = [8, 8, 4], strides = [1, 1, 1]} : vector<10x10x4xf32> to vector<8x8x4xf32>
    %c0_4 = arith.constant 0 : index
    %c0_5 = arith.constant 0 : index
    %c0_6 = arith.constant 0 : index
    %4 = vector.load %arg8[%c0_4, %c0_5, %c0_6] : memref<8x8x108xf32, #tpu.memory_space<vmem>>, vector<8x8x4xf32>
    tpu.vector_store %arg8[%c0_4, %c0_5, %c0_6], %3 {strides = array<i32>} : memref<8x8x108xf32, #tpu.memory_space<vmem>>, vector<8x8x4xf32>,
    %5 = vector.extract_strided_slice %2 {offsets = [0, 1, 0], sizes = [8, 8, 4], strides = [1, 1, 1]} : vector<10x10x4xf32> to vector<8x8x4xf32>
    %c0_7 = arith.constant 0 : index
    %c0_8 = arith.constant 0 : index
    %c4 = arith.constant 4 : index
    %6 = vector.load %arg8[%c0_7, %c0_8, %c4] : memref<8x8x108xf32, #tpu.memory_space<vmem>>, vector<8x8x4xf32>
    tpu.vector_store %arg8[%c0_7, %c0_8, %c4], %5 {strides = array<i32>} : memref<8x8x108xf32, #tpu.memory_space<vmem>>, vector<8x8x4xf32>,
    %7 = vector.extract_strided_slice %2 {offsets = [0, 2, 0], sizes = [8, 8, 4], strides = [1, 1, 1]} : vector<10x10x4xf32> to vector<8x8x4xf32>
    %c0_9 = arith.constant 0 : index
    %c0_10 = arith.constant 0 : index
    %c8 = arith.constant 8 : index
    %8 = vector.load %arg8[%c0_9, %c0_10, %c8] : memref<8x8x108xf32, #tpu.memory_space<vmem>>, vector<8x8x4xf32>
    tpu.vector_store %arg8[%c0_9, %c0_10, %c8], %7 {strides = array<i32>} : memref<8x8x108xf32, #tpu.memory_space<vmem>>, vector<8x8x4xf32>,
    %9 = vector.extract_strided_slice %2 {offsets = [1, 0, 0], sizes = [8, 8, 4], strides = [1, 1, 1]} : vector<10x10x4xf32> to vector<8x8x4xf32>
    %c0_11 = arith.constant 0 : index
    %c0_12 = arith.constant 0 : index
    %c12 = arith.constant 12 : index
    %10 = vector.load %arg8[%c0_11, %c0_12, %c12] : memref<8x8x108xf32, #tpu.memory_space<vmem>>, vector<8x8x4xf32>
    tpu.vector_store %arg8[%c0_11, %c0_12, %c12], %9 {strides = array<i32>} : memref<8x8x108xf32, #tpu.memory_space<vmem>>, vector<8x8x4xf32>,
    %11 = vector.extract_strided_slice %2 {offsets = [1, 1, 0], sizes = [8, 8, 4], strides = [1, 1, 1]} : vector<10x10x4xf32> to vector<8x8x4xf32>
    %c0_13 = arith.constant 0 : index
    %c0_14 = arith.constant 0 : index
    %c16 = arith.constant 16 : index
    %12 = vector.load %arg8[%c0_13, %c0_14, %c16] : memref<8x8x108xf32, #tpu.memory_space<vmem>>, vector<8x8x4xf32>
    tpu.vector_store %arg8[%c0_13, %c0_14, %c16], %11 {strides = array<i32>} : memref<8x8x108xf32, #tpu.memory_space<vmem>>, vector<8x8x4xf32>,
    %13 = vector.extract_strided_slice %2 {offsets = [1, 2, 0], sizes = [8, 8, 4], strides = [1, 1, 1]} : vector<10x10x4xf32> to vector<8x8x4xf32>
    %c0_15 = arith.constant 0 : index
    %c0_16 = arith.constant 0 : index
    %c20 = arith.constant 20 : index
    %14 = vector.load %arg8[%c0_15, %c0_16, %c20] : memref<8x8x108xf32, #tpu.memory_space<vmem>>, vector<8x8x4xf32>
    tpu.vector_store %arg8[%c0_15, %c0_16, %c20], %13 {strides = array<i32>} : memref<8x8x108xf32, #tpu.memory_space<vmem>>, vector<8x8x4xf32>,
    %15 = vector.extract_strided_slice %2 {offsets = [2, 0, 0], sizes = [8, 8, 4], strides = [1, 1, 1]} : vector<10x10x4xf32> to vector<8x8x4xf32>
    %c0_17 = arith.constant 0 : index
    %c0_18 = arith.constant 0 : index
    %c24 = arith.constant 24 : index
    %16 = vector.load %arg8[%c0_17, %c0_18, %c24] : memref<8x8x108xf32, #tpu.memory_space<vmem>>, vector<8x8x4xf32>
    tpu.vector_store %arg8[%c0_17, %c0_18, %c24], %15 {strides = array<i32>} : memref<8x8x108xf32, #tpu.memory_space<vmem>>, vector<8x8x4xf32>,
    %17 = vector.extract_strided_slice %2 {offsets = [2, 1, 0], sizes = [8, 8, 4], strides = [1, 1, 1]} : vector<10x10x4xf32> to vector<8x8x4xf32>
    %c0_19 = arith.constant 0 : index
    %c0_20 = arith.constant 0 : index
    %c28 = arith.constant 28 : index
    %18 = vector.load %arg8[%c0_19, %c0_20, %c28] : memref<8x8x108xf32, #tpu.memory_space<vmem>>, vector<8x8x4xf32>
    tpu.vector_store %arg8[%c0_19, %c0_20, %c28], %17 {strides = array<i32>} : memref<8x8x108xf32, #tpu.memory_space<vmem>>, vector<8x8x4xf32>,
    %19 = vector.extract_strided_slice %2 {offsets = [2, 2, 0], sizes = [8, 8, 4], strides = [1, 1, 1]} : vector<10x10x4xf32> to vector<8x8x4xf32>
    %c0_21 = arith.constant 0 : index
    %c0_22 = arith.constant 0 : index
    %c32 = arith.constant 32 : index
    %20 = vector.load %arg8[%c0_21, %c0_22, %c32] : memref<8x8x108xf32, #tpu.memory_space<vmem>>, vector<8x8x4xf32>
    tpu.vector_store %arg8[%c0_21, %c0_22, %c32], %19 {strides = array<i32>} : memref<8x8x108xf32, #tpu.memory_space<vmem>>, vector<8x8x4xf32>,
    %c0_23 = arith.constant 0 : index
    %c0_24 = arith.constant 0 : index
    %c0_25 = arith.constant 0 : index
    %c0_26 = arith.constant 0 : index
    %c0_27 = arith.constant 0 : index
    %21 = vector.load %arg3[%c0_23, %c0_24, %c0_25, %c0_26, %c0_27] : memref<1x1x10x10x4xbf16, #tpu.memory_space<vmem>>, vector<1x1x10x10x4xbf16>
    %22 = vector.shape_cast %21 : vector<1x1x10x10x4xbf16> to vector<10x10x4xbf16>
    %23 = arith.extf %22 : vector<10x10x4xbf16> to vector<10x10x4xf32>
    %24 = vector.extract_strided_slice %23 {offsets = [0, 0, 0], sizes = [8, 8, 4], strides = [1, 1, 1]} : vector<10x10x4xf32> to vector<8x8x4xf32>
    %c0_28 = arith.constant 0 : index
    %c0_29 = arith.constant 0 : index
    %c36 = arith.constant 36 : index
    %25 = vector.load %arg8[%c0_28, %c0_29, %c36] : memref<8x8x108xf32, #tpu.memory_space<vmem>>, vector<8x8x4xf32>
    tpu.vector_store %arg8[%c0_28, %c0_29, %c36], %24 {strides = array<i32>} : memref<8x8x108xf32, #tpu.memory_space<vmem>>, vector<8x8x4xf32>,
    %26 = vector.extract_strided_slice %23 {offsets = [0, 1, 0], sizes = [8, 8, 4], strides = [1, 1, 1]} : vector<10x10x4xf32> to vector<8x8x4xf32>
    %c0_30 = arith.constant 0 : index
    %c0_31 = arith.constant 0 : index
    %c40 = arith.constant 40 : index
    %27 = vector.load %arg8[%c0_30, %c0_31, %c40] : memref<8x8x108xf32, #tpu.memory_space<vmem>>, vector<8x8x4xf32>
    tpu.vector_store %arg8[%c0_30, %c0_31, %c40], %26 {strides = array<i32>} : memref<8x8x108xf32, #tpu.memory_space<vmem>>, vector<8x8x4xf32>,
    %28 = vector.extract_strided_slice %23 {offsets = [0, 2, 0], sizes = [8, 8, 4], strides = [1, 1, 1]} : vector<10x10x4xf32> to vector<8x8x4xf32>
    %c0_32 = arith.constant 0 : index
    %c0_33 = arith.constant 0 : index
    %c44 = arith.constant 44 : index
    %29 = vector.load %arg8[%c0_32, %c0_33, %c44] : memref<8x8x108xf32, #tpu.memory_space<vmem>>, vector<8x8x4xf32>
    tpu.vector_store %arg8[%c0_32, %c0_33, %c44], %28 {strides = array<i32>} : memref<8x8x108xf32, #tpu.memory_space<vmem>>, vector<8x8x4xf32>,
    %30 = vector.extract_strided_slice %23 {offsets = [1, 0, 0], sizes = [8, 8, 4], strides = [1, 1, 1]} : vector<10x10x4xf32> to vector<8x8x4xf32>
    %c0_34 = arith.constant 0 : index
    %c0_35 = arith.constant 0 : index
    %c48 = arith.constant 48 : index
    %31 = vector.load %arg8[%c0_34, %c0_35, %c48] : memref<8x8x108xf32, #tpu.memory_space<vmem>>, vector<8x8x4xf32>
    tpu.vector_store %arg8[%c0_34, %c0_35, %c48], %30 {strides = array<i32>} : memref<8x8x108xf32, #tpu.memory_space<vmem>>, vector<8x8x4xf32>,
    %32 = vector.extract_strided_slice %23 {offsets = [1, 1, 0], sizes = [8, 8, 4], strides = [1, 1, 1]} : vector<10x10x4xf32> to vector<8x8x4xf32>
    %c0_36 = arith.constant 0 : index
    %c0_37 = arith.constant 0 : index
    %c52 = arith.constant 52 : index
    %33 = vector.load %arg8[%c0_36, %c0_37, %c52] : memref<8x8x108xf32, #tpu.memory_space<vmem>>, vector<8x8x4xf32>
    tpu.vector_store %arg8[%c0_36, %c0_37, %c52], %32 {strides = array<i32>} : memref<8x8x108xf32, #tpu.memory_space<vmem>>, vector<8x8x4xf32>,
    %34 = vector.extract_strided_slice %23 {offsets = [1, 2, 0], sizes = [8, 8, 4], strides = [1, 1, 1]} : vector<10x10x4xf32> to vector<8x8x4xf32>
    %c0_38 = arith.constant 0 : index
    %c0_39 = arith.constant 0 : index
    %c56 = arith.constant 56 : index
    %35 = vector.load %arg8[%c0_38, %c0_39, %c56] : memref<8x8x108xf32, #tpu.memory_space<vmem>>, vector<8x8x4xf32>
    tpu.vector_store %arg8[%c0_38, %c0_39, %c56], %34 {strides = array<i32>} : memref<8x8x108xf32, #tpu.memory_space<vmem>>, vector<8x8x4xf32>,
    %36 = vector.extract_strided_slice %23 {offsets = [2, 0, 0], sizes = [8, 8, 4], strides = [1, 1, 1]} : vector<10x10x4xf32> to vector<8x8x4xf32>
    %c0_40 = arith.constant 0 : index
    %c0_41 = arith.constant 0 : index
    %c60 = arith.constant 60 : index
    %37 = vector.load %arg8[%c0_40, %c0_41, %c60] : memref<8x8x108xf32, #tpu.memory_space<vmem>>, vector<8x8x4xf32>
    tpu.vector_store %arg8[%c0_40, %c0_41, %c60], %36 {strides = array<i32>} : memref<8x8x108xf32, #tpu.memory_space<vmem>>, vector<8x8x4xf32>,
    %38 = vector.extract_strided_slice %23 {offsets = [2, 1, 0], sizes = [8, 8, 4], strides = [1, 1, 1]} : vector<10x10x4xf32> to vector<8x8x4xf32>
    %c0_42 = arith.constant 0 : index
    %c0_43 = arith.constant 0 : index
    %c64 = arith.constant 64 : index
    %39 = vector.load %arg8[%c0_42, %c0_43, %c64] : memref<8x8x108xf32, #tpu.memory_space<vmem>>, vector<8x8x4xf32>
    tpu.vector_store %arg8[%c0_42, %c0_43, %c64], %38 {strides = array<i32>} : memref<8x8x108xf32, #tpu.memory_space<vmem>>, vector<8x8x4xf32>,
    %40 = vector.extract_strided_slice %23 {offsets = [2, 2, 0], sizes = [8, 8, 4], strides = [1, 1, 1]} : vector<10x10x4xf32> to vector<8x8x4xf32>
    %c0_44 = arith.constant 0 : index
    %c0_45 = arith.constant 0 : index
    %c68 = arith.constant 68 : index
    %41 = vector.load %arg8[%c0_44, %c0_45, %c68] : memref<8x8x108xf32, #tpu.memory_space<vmem>>, vector<8x8x4xf32>
    tpu.vector_store %arg8[%c0_44, %c0_45, %c68], %40 {strides = array<i32>} : memref<8x8x108xf32, #tpu.memory_space<vmem>>, vector<8x8x4xf32>,
    %c0_46 = arith.constant 0 : index
    %c0_47 = arith.constant 0 : index
    %c0_48 = arith.constant 0 : index
    %c0_49 = arith.constant 0 : index
    %c0_50 = arith.constant 0 : index
    %42 = vector.load %arg4[%c0_46, %c0_47, %c0_48, %c0_49, %c0_50] : memref<1x1x10x10x4xbf16, #tpu.memory_space<vmem>>, vector<1x1x10x10x4xbf16>
    %43 = vector.shape_cast %42 : vector<1x1x10x10x4xbf16> to vector<10x10x4xbf16>
    %44 = arith.extf %43 : vector<10x10x4xbf16> to vector<10x10x4xf32>
    %45 = vector.extract_strided_slice %44 {offsets = [0, 0, 0], sizes = [8, 8, 4], strides = [1, 1, 1]} : vector<10x10x4xf32> to vector<8x8x4xf32>
    %c0_51 = arith.constant 0 : index
    %c0_52 = arith.constant 0 : index
    %c72 = arith.constant 72 : index
    %46 = vector.load %arg8[%c0_51, %c0_52, %c72] : memref<8x8x108xf32, #tpu.memory_space<vmem>>, vector<8x8x4xf32>
    tpu.vector_store %arg8[%c0_51, %c0_52, %c72], %45 {strides = array<i32>} : memref<8x8x108xf32, #tpu.memory_space<vmem>>, vector<8x8x4xf32>,
    %47 = vector.extract_strided_slice %44 {offsets = [0, 1, 0], sizes = [8, 8, 4], strides = [1, 1, 1]} : vector<10x10x4xf32> to vector<8x8x4xf32>
    %c0_53 = arith.constant 0 : index
    %c0_54 = arith.constant 0 : index
    %c76 = arith.constant 76 : index
    %48 = vector.load %arg8[%c0_53, %c0_54, %c76] : memref<8x8x108xf32, #tpu.memory_space<vmem>>, vector<8x8x4xf32>
    tpu.vector_store %arg8[%c0_53, %c0_54, %c76], %47 {strides = array<i32>} : memref<8x8x108xf32, #tpu.memory_space<vmem>>, vector<8x8x4xf32>,
    %49 = vector.extract_strided_slice %44 {offsets = [0, 2, 0], sizes = [8, 8, 4], strides = [1, 1, 1]} : vector<10x10x4xf32> to vector<8x8x4xf32>
    %c0_55 = arith.constant 0 : index
    %c0_56 = arith.constant 0 : index
    %c80 = arith.constant 80 : index
    %50 = vector.load %arg8[%c0_55, %c0_56, %c80] : memref<8x8x108xf32, #tpu.memory_space<vmem>>, vector<8x8x4xf32>
    tpu.vector_store %arg8[%c0_55, %c0_56, %c80], %49 {strides = array<i32>} : memref<8x8x108xf32, #tpu.memory_space<vmem>>, vector<8x8x4xf32>,
    %51 = vector.extract_strided_slice %44 {offsets = [1, 0, 0], sizes = [8, 8, 4], strides = [1, 1, 1]} : vector<10x10x4xf32> to vector<8x8x4xf32>
    %c0_57 = arith.constant 0 : index
    %c0_58 = arith.constant 0 : index
    %c84 = arith.constant 84 : index
    %52 = vector.load %arg8[%c0_57, %c0_58, %c84] : memref<8x8x108xf32, #tpu.memory_space<vmem>>, vector<8x8x4xf32>
    tpu.vector_store %arg8[%c0_57, %c0_58, %c84], %51 {strides = array<i32>} : memref<8x8x108xf32, #tpu.memory_space<vmem>>, vector<8x8x4xf32>,
    %53 = vector.extract_strided_slice %44 {offsets = [1, 1, 0], sizes = [8, 8, 4], strides = [1, 1, 1]} : vector<10x10x4xf32> to vector<8x8x4xf32>
    %c0_59 = arith.constant 0 : index
    %c0_60 = arith.constant 0 : index
    %c88 = arith.constant 88 : index
    %54 = vector.load %arg8[%c0_59, %c0_60, %c88] : memref<8x8x108xf32, #tpu.memory_space<vmem>>, vector<8x8x4xf32>
    tpu.vector_store %arg8[%c0_59, %c0_60, %c88], %53 {strides = array<i32>} : memref<8x8x108xf32, #tpu.memory_space<vmem>>, vector<8x8x4xf32>,
    %55 = vector.extract_strided_slice %44 {offsets = [1, 2, 0], sizes = [8, 8, 4], strides = [1, 1, 1]} : vector<10x10x4xf32> to vector<8x8x4xf32>
    %c0_61 = arith.constant 0 : index
    %c0_62 = arith.constant 0 : index
    %c92 = arith.constant 92 : index
    %56 = vector.load %arg8[%c0_61, %c0_62, %c92] : memref<8x8x108xf32, #tpu.memory_space<vmem>>, vector<8x8x4xf32>
    tpu.vector_store %arg8[%c0_61, %c0_62, %c92], %55 {strides = array<i32>} : memref<8x8x108xf32, #tpu.memory_space<vmem>>, vector<8x8x4xf32>,
    %57 = vector.extract_strided_slice %44 {offsets = [2, 0, 0], sizes = [8, 8, 4], strides = [1, 1, 1]} : vector<10x10x4xf32> to vector<8x8x4xf32>
    %c0_63 = arith.constant 0 : index
    %c0_64 = arith.constant 0 : index
    %c96 = arith.constant 96 : index
    %58 = vector.load %arg8[%c0_63, %c0_64, %c96] : memref<8x8x108xf32, #tpu.memory_space<vmem>>, vector<8x8x4xf32>
    tpu.vector_store %arg8[%c0_63, %c0_64, %c96], %57 {strides = array<i32>} : memref<8x8x108xf32, #tpu.memory_space<vmem>>, vector<8x8x4xf32>,
    %59 = vector.extract_strided_slice %44 {offsets = [2, 1, 0], sizes = [8, 8, 4], strides = [1, 1, 1]} : vector<10x10x4xf32> to vector<8x8x4xf32>
    %c0_65 = arith.constant 0 : index
    %c0_66 = arith.constant 0 : index
    %c100 = arith.constant 100 : index
    %60 = vector.load %arg8[%c0_65, %c0_66, %c100] : memref<8x8x108xf32, #tpu.memory_space<vmem>>, vector<8x8x4xf32>
    tpu.vector_store %arg8[%c0_65, %c0_66, %c100], %59 {strides = array<i32>} : memref<8x8x108xf32, #tpu.memory_space<vmem>>, vector<8x8x4xf32>,
    %61 = vector.extract_strided_slice %44 {offsets = [2, 2, 0], sizes = [8, 8, 4], strides = [1, 1, 1]} : vector<10x10x4xf32> to vector<8x8x4xf32>
    %c0_67 = arith.constant 0 : index
    %c0_68 = arith.constant 0 : index
    %c104 = arith.constant 104 : index
    %62 = vector.load %arg8[%c0_67, %c0_68, %c104] : memref<8x8x108xf32, #tpu.memory_space<vmem>>, vector<8x8x4xf32>
    tpu.vector_store %arg8[%c0_67, %c0_68, %c104], %61 {strides = array<i32>} : memref<8x8x108xf32, #tpu.memory_space<vmem>>, vector<8x8x4xf32>,
    %c0_69 = arith.constant 0 : index
    %c0_70 = arith.constant 0 : index
    %c0_71 = arith.constant 0 : index
    %63 = vector.load %arg8[%c0_69, %c0_70, %c0_71] : memref<8x8x108xf32, #tpu.memory_space<vmem>>, vector<8x8x108xf32>
    %64 = vector.shape_cast %63 : vector<8x8x108xf32> to vector<64x108xf32>
    %65 = arith.truncf %64 : vector<64x108xf32> to vector<64x108xbf16>
    %c0_72 = arith.constant 0 : index
    %c0_73 = arith.constant 0 : index
    %66 = vector.load %arg5[%c0_72, %c0_73] : memref<108x32xbf16, #tpu.memory_space<vmem>>, vector<108x32xbf16>
    %cst = arith.constant dense<0.000000e+00> : vector<64x32xf32>
    %67 = tpu.matmul %65, %66, %cst {dimension_numbers = #tpu.dot_dimension_numbers<[1], [0], [0], [1], [0, 0, 1, 1], [], []>} : vector<64x108xbf16>, vector<108x32xbf16>, vector<64x32xf32> -> vector<64x32xf32>
    %c0_74 = arith.constant 0 : index
    %c0_75 = arith.constant 0 : index
    %68 = vector.load %arg6[%c0_74, %c0_75] : memref<1x32xf32, #tpu.memory_space<vmem>>, vector<1x32xf32>
    %69 = vector.broadcast %68 : vector<1x32xf32> to vector<64x32xf32>
    %70 = arith.addf %67, %69 : vector<64x32xf32>
    %c0_76 = arith.constant 0 : index
    %c0_77 = arith.constant 0 : index
    %c0_78 = arith.constant 0 : index
    %c0_79 = arith.constant 0 : index
    %71 = vector.load %arg7[%c0_76, %c0_77, %c0_78, %c0_79] : memref<1x1x64x32xf32, #tpu.memory_space<vmem>>, vector<1x1x64x32xf32>
    %72 = vector.shape_cast %71 : vector<1x1x64x32xf32> to vector<64x32xf32>
    %73 = vector.shape_cast %70 : vector<64x32xf32> to vector<1x1x64x32xf32>
    tpu.vector_store %arg7[%c0_76, %c0_77, %c0_78, %c0_79], %73 {strides = array<i32>} : memref<1x1x64x32xf32, #tpu.memory_space<vmem>>, vector<1x1x64x32xf32>,
    return
  }
  func.func @transform_0(%arg0: i32, %arg1: i32) -> (i32, i32, i32, i32, i32) {
    %c0_i32 = arith.constant 0 : i32
    %0 = arith.addi %arg1, %c0_i32 : i32
    %c0_i32_0 = arith.constant 0 : i32
    %c0_i32_1 = arith.constant 0 : i32
    %c0_i32_2 = arith.constant 0 : i32
    %c0_i32_3 = arith.constant 0 : i32
    return %arg0, %0, %c0_i32_0, %c0_i32_1, %c0_i32_2 : i32, i32, i32, i32, i32
  }
  func.func @transform_1(%arg0: i32, %arg1: i32) -> (i32, i32, i32, i32, i32) {
    %c1_i32 = arith.constant 1 : i32
    %0 = arith.addi %arg1, %c1_i32 : i32
    %c0_i32 = arith.constant 0 : i32
    %c0_i32_0 = arith.constant 0 : i32
    %c0_i32_1 = arith.constant 0 : i32
    %c0_i32_2 = arith.constant 0 : i32
    return %arg0, %0, %c0_i32, %c0_i32_0, %c0_i32_1 : i32, i32, i32, i32, i32
  }
  func.func @transform_2(%arg0: i32, %arg1: i32) -> (i32, i32, i32, i32, i32) {
    %c2_i32 = arith.constant 2 : i32
    %0 = arith.addi %arg1, %c2_i32 : i32
    %c0_i32 = arith.constant 0 : i32
    %c0_i32_0 = arith.constant 0 : i32
    %c0_i32_1 = arith.constant 0 : i32
    %c0_i32_2 = arith.constant 0 : i32
    return %arg0, %0, %c0_i32, %c0_i32_0, %c0_i32_1 : i32, i32, i32, i32, i32
  }
  func.func @transform_3(%arg0: i32, %arg1: i32) -> (i32, i32) {
    %c0_i32 = arith.constant 0 : i32
    %c0_i32_0 = arith.constant 0 : i32
    %c0_i32_1 = arith.constant 0 : i32
    return %c0_i32, %c0_i32_0 : i32, i32
  }
  func.func @transform_4(%arg0: i32, %arg1: i32) -> (i32, i32) {
    %c0_i32 = arith.constant 0 : i32
    %c0_i32_0 = arith.constant 0 : i32
    %c0_i32_1 = arith.constant 0 : i32
    return %c0_i32, %c0_i32_0 : i32, i32
  }
  func.func @transform_5(%arg0: i32, %arg1: i32) -> (i32, i32, i32, i32) {
    %c0_i32 = arith.constant 0 : i32
    %c0_i32_0 = arith.constant 0 : i32
    %c0_i32_1 = arith.constant 0 : i32
    return %arg0, %arg1, %c0_i32, %c0_i32_0 : i32, i32, i32, i32
  }
}

</mosaic_0001>

<bundles_post_ra>
// kernel: tpu_custom_call.1
= control target key start
LH: loop header
LB: loop body
LE: loop exit
PB: predicated region body
PF: predicated region fallthrough
CT: control target
= control target key end

     0   :  { %s3414_s18 = smov 0   ;;  %s3416_s19 = smov 0   ;;  %s4388_s0 = inlined_call_operand.vmem [shape: bf16[2,6,10,10,4], index: 0, kind: input, shape index: {}]   ;;  %s4389_s1 = inlined_call_operand.vmem [shape: bf16[2,6,10,10,4], index: 1, kind: input, shape index: {}]   ;;  %s4390_s2 = inlined_call_operand.vmem [shape: bf16[2,6,10,10,4], index: 2, kind: input, shape index: {}]   ;;  %s4391_s3 = inlined_call_operand.vmem [shape: bf16[108,32], index: 3, kind: input, shape index: {}]   ;;  %s4392_s4 = inlined_call_operand.vmem [shape: f32[1,32], index: 4, kind: input, shape index: {}]   ;;  %s4393_s5 = inlined_call_operand.vmem [shape: f32[2,4,64,32], index: 5, kind: output, shape index: {}]  }
   0x1   :  { %s3418_s20 = smov 0   ;;  %s3420_s21 = smov 0  }
   0x2   :  { %s3422_s22 = smov 0  }
   0x3 LB: > { %s24_s23 = sadd.s32 1, %s3348_s20  ;;  %s27_s24 = sadd.s32 1, %s3352_s21  ;;  %s3356_s22 = sphi %s3422_s22, %s15_s22   ;;  %s3352_s21 = sphi %s3420_s21, %s4398_s21   ;;  %s3348_s20 = sphi %s3418_s20, %s4397_s20   ;;  %s3344_s19 = sphi %s3416_s19, %s4396_s19   ;;  %s3340_s18 = sphi %s3414_s18, %s4395_s18  }
   0x4   : > { %p25_p0 = scmp.ge.s32.totalorder %s24_s23, 4  ;;  %p2291_p1 = scmp.ge.s32.totalorder %s3356_s22, 1 }
   0x5   : > { %p247_p2 = scmp.lt.s32.totalorder %s3356_s22, 9 }
   0x6   : > { %s4400_s23 = smov (%p25_p0, %s24_s23), 0  ;;  %s4402_s24 = smov (!%p25_p0, %s27_s24), %s3352_s21 }
   0x7   : > { %p248_p3 = pnand %p2291_p1, %p247_p2  ;;  %p29_p4 = scmp.ge.s32.totalorder %s4402_s24, 2 }
   0x8   : > { %p303_p5 = scmp.lt.s32.totalorder (!%p248_p3), %s3344_s19, 1  ;;  %p305_p6 = scmp.lt.s32.totalorder (!%p248_p3), %s3340_s18, 5  ;;  %vm384_vm0 = vcmask (!%p248_p3), 31744   ;;  %vm457_vm1 = vcmask (!%p248_p3), 64545   ;;  %vm459_vm2 = vcmask (!%p248_p3), 57376   ;;  %vm523_vm3 = vcmask (!%p248_p3), 97346  }
   0x9   : > { %s4404_s24 = smov (%p29_p4, %s4402_s24), 0  ;;  %251 = sbr.rel (%p248_p3) target bundleno = 723 (0x2d3), region = 40 }
   0xa   : > { %s3358_s8 = smov (!%p248_p3), 4   ;;  %s3359_s9 = smov (!%p248_p3), 8   ;;  %vm525_vm4 = vcmask (!%p248_p3), 91200   ;;  %vm566_vm5 = vcmask (!%p248_p3), 130144   ;;  %vm624_vm6 = vcmask (!%p248_p3), 162945   ;;  %vm626_vm7 = vcmask (!%p248_p3), 155776  }
   0xb   : > { %s3360_s10 = smov (!%p248_p3), 12   ;;  %s3361_s11 = smov (!%p248_p3), 16   ;;  %vm690_vm8 = vcmask (!%p248_p3), 195746   ;;  %vm692_vm9 = vcmask (!%p248_p3), 189600   ;;  %vm733_vm10 = vcmask (!%p248_p3), 228544   ;;  %vm791_vm11 = vcmask (!%p248_p3), 261345  }
   0xc   : > { %s3362_s12 = smov (!%p248_p3), 20   ;;  %s3363_s13 = smov (!%p248_p3), 24   ;;  %vm793_vm12 = vcmask (!%p248_p3), 254176   ;;  %vm857_vm13 = vcmask (!%p248_p3), 294146   ;;  %vm859_vm14 = vcmask (!%p248_p3), 288000   ;;  %vm947_vm15 = vcmask (!%p248_p3), 326944  }
   0xd   : > { %s312_s14 = sadd.s32 (!%p248_p3), 1, %s3340_s18  ;;  %s3364_s15 = smov (!%p248_p3), 28  }
   0xe   : > { %p315_p7 = scmp.lt.s32.totalorder (!%p248_p3), %s312_s14, 5  ;;  %s3366_s6 = smov (!%p248_p3), 36  }
   0xf   : > { %p336_p9 = scmp.lt.s32.totalorder (!%p248_p3), %s3340_s18, 3 }
  0x10   : > { %s4406_s19 = smov (!%p303_p5, %s3344_s19), 1  ;;  %s4408_s14 = smov (!%p315_p7, %s312_s14), 5 }
  0x11   : > { %s306_s25 = scalar_select %p305_p6, %s3340_s18, 5 }
  0x12   : > { %s3451_s26 = smul.u32 120, %s4406_s19 }
  0x13   : > { %s2361_s27 = smul.u32 20, %s306_s25 }
  0x14   : > { %s2363_s16 = smul.u32 20, %s4408_s14 }
  0x15   : > { %s309_s28 = sadd.s32 %s3451_s26, %s2361_s27  ;;  %s3365_s27 = smov 32  }
  0x16   : > { %s2292_s29 = sshll.u32 %s309_s28, 2  ;;  %s319_s17 = sadd.s32 %s2363_s16, %s3451_s26 }
  0x17   : > { %s3457_s7 = scalar_lea.vmem %s4388_s0, %s2292_s29  ;;  %s2293_s25 = sshll.u32 %s319_s17, 2 }
  0x18   : > { %v348_v0 = vld [vmem:[%s3457_s7] ss:$16 sps:$4 sm:$0xff]   ;;  %v349_v1 = vld [vmem:[%s3457_s7 + $0x14] sm:$0x1]  ;;  %v345_v2 = vld [vmem:[%s3457_s7 + $0x4] sm:$0x1]  ;;  %s3567_s30 = scalar_lea.vmem %s4389_s1, %s2293_s25 }
  0x19   : > { %v3462_v3 = vunpack.c.h.bf16 %v348_v0  ;;  %v369_v4 = vunpack.c.l.bf16 %v349_v1  ;;  %v364_v5 = vunpack.c.l.bf16 %v348_v0  ;;  %v365_v6 = vunpack.c.l.bf16 %v345_v2  ;;  %v350_v7 = vld [vmem:[%s3457_s7 + $0x8] ss:$16 sps:$4 sm:$0xff]   ;;  %v351_v8 = vld [vmem:[%s3457_s7 + $0x1c] sm:$0x1]  ;;  %v347_v11 = vld [vmem:[%s3457_s7 + $0xc] sm:$0x1] }
  0x1a   : > { %v3466_v9 = vunpack.c.h.bf16 %v350_v7  ;;  %v371_v10 = vunpack.c.l.bf16 %v351_v8  ;;  %v366_v12 = vunpack.c.l.bf16 %v350_v7  ;;  %v354_v13 = vld [vmem:[%s3457_s7 + $0x20] ss:$8 sps:$4 sm:$0xff]   ;;  %v355_v14 = vld [vmem:[%s3457_s7 + $0x2c] sm:$0x1]  ;;  %v367_v17 = vunpack.c.l.bf16 %v347_v11  ;;  %v353_v19 = vld [vmem:[%s3457_s7 + $0x24] sm:$0x1] }
  0x1b   : > { %v3472_v15 = vpack.i.bf16 %v369_v4, %v3462_v3  ;;  %v2431_v16 = vpack.i.bf16 %v365_v6, %v364_v5  ;;  %v3474_v18 = vunpack.c.h.bf16 %v354_v13  ;;  %v358_v20 = vld [vmem:[%s3457_s7 + $0x30] ss:$8 sps:$4 sm:$0xff]   ;;  %387 = vst.msk [vmem:[#allocation2 + $0x10] sm:$0xff] %vm384_vm0, %v3462_v3  ;;  %385 = vst.msk [vmem:[#allocation2] sm:$0xff] %vm384_vm0, %v364_v5  ;;  %v375_v22 = vunpack.c.l.bf16 %v355_v14  ;;  %v359_v28 = vld [vmem:[%s3457_s7 + $0x3c] sm:$0x1] }
  0x1c   : > { %v3482_v21 = vpack.i.bf16 %v371_v10, %v3466_v9  ;;  %v3484_v23 = vunpack.c.l.bf16 %v354_v13  ;;  %386 = vst.msk [vmem:[#allocation2 + $0x8] sm:$0xff] %vm384_vm0, %v366_v12  ;;  %388 = vst.msk [vmem:[#allocation2 + $0x18] sm:$0xff] %vm384_vm0, %v3466_v9  ;;  %v2436_v24 = vpack.i.bf16 %v367_v17, %v366_v12  ;;  %v373_v25 = vunpack.c.l.bf16 %v353_v19  ;;  %v357_v29 = vld [vmem:[%s3457_s7 + $0x34] sm:$0x1]  ;;  %v360_v39 = vld [vmem:[%s3457_s7 + $0x40] ss:$8 sps:$4 sm:$0xff]  }
  0x1d   : > { %2442 = vrot.lane.b32.xlu1 %v3472_v15, %s3358_s8  ;;  %2432 = vrot.lane.b32.xlu0 %v2431_v16, %s3358_s8  ;;  %v3490_v26 = vunpack.c.h.bf16 %v358_v20  ;;  %v3492_v27 = vunpack.c.l.bf16 %v358_v20  ;;  %390 = vst.msk [vmem:[#allocation2 + $0x28] sm:$0xff] %vm384_vm0, %v3474_v18  ;;  %v3506_v30 = vpack.i.bf16 %v375_v22, %v3474_v18  ;;  %v379_v32 = vunpack.c.l.bf16 %v359_v28  ;;  %v361_v45 = vld [vmem:[%s3457_s7 + $0x44] sm:$0x1]  ;;  %v363_v50 = vld [vmem:[%s3457_s7 + $0x4c] sm:$0x1]  ;;  %s3367_s7 = smov 40  }
  0x1e   : > { %389 = vst.msk [vmem:[#allocation2 + $0x20] sm:$0xff] %vm384_vm0, %v3484_v23  ;;  %v3509_v31 = vpack.i.bf16 %v373_v25, %v3484_v23  ;;  %v377_v33 = vunpack.c.l.bf16 %v357_v29  ;;  %v2616_v36 = vpack.i.bf16 %v3474_v18, %v3484_v23  ;;  %v2611_v37 = vpack.i.bf16 %v3466_v9, %v3462_v3  ;;  %v879_v53 = vld [vmem:[%s3567_s30 + $0x10] ss:$8 sps:$4 sm:$0xff]   ;;  %v875_v54 = vld [vmem:[%s3567_s30] ss:$8 sps:$4 sm:$0xff]   ;;  %s3374_s29 = smov 68  }
  0x1f   : > { %391 = vst.msk [vmem:[#allocation2 + $0x30] sm:$0xff] %vm384_vm0, %v3492_v27  ;;  %392 = vst.msk [vmem:[#allocation2 + $0x38] sm:$0xff] %vm384_vm0, %v3490_v26  ;;  %v3514_v34 = vpack.i.bf16 %v379_v32, %v3490_v26  ;;  %v2621_v38 = vpack.i.bf16 %v3490_v26, %v3492_v27  ;;  %v2516_v40 = vpack.i.bf16 %v3484_v23, %v3466_v9  ;;  %v380_v42 = vunpack.c.l.bf16 %v360_v39  ;;  %v887_v59 = vld [vmem:[%s3567_s30 + $0x30] ss:$8 sps:$4 sm:$0xff]   ;;  %v883_v60 = vld [vmem:[%s3567_s30 + $0x20] ss:$8 sps:$4 sm:$0xff]  }
  0x20   : > { %v3517_v35 = vpack.i.bf16 %v377_v33, %v3492_v27  ;;  %v2511_v41 = vpack.i.bf16 %v3462_v3, %v366_v12  ;;  %v2521_v44 = vpack.i.bf16 %v3492_v27, %v3474_v18  ;;  %v381_v46 = vunpack.c.l.bf16 %v361_v45  ;;  %v878_v3 = vld [vmem:[%s3567_s30 + $0xc] sm:$0x1]  ;;  %v876_v4 = vld [vmem:[%s3567_s30 + $0x4] sm:$0x1]  ;;  %v882_v9 = vld [vmem:[%s3567_s30 + $0x1c] sm:$0x1] }
  0x21   : > { %2447 = vrot.lane.b32.xlu1 %v3482_v21, %s3358_s8  ;;  %2437 = vrot.lane.b32.xlu0 %v2436_v24, %s3358_s8  ;;  %v2526_v43 = vpack.i.bf16 %v380_v42, %v3490_v26  ;;  %v382_v48 = vunpack.c.h.bf16 %v360_v39  ;;  %v383_v51 = vunpack.c.l.bf16 %v363_v50  ;;  %v3575_v55 = vunpack.c.l.bf16 %v879_v53  ;;  %v880_v10 = vld [vmem:[%s3567_s30 + $0x14] sm:$0x1]  ;;  %v884_v22 = vld [vmem:[%s3567_s30 + $0x24] sm:$0x1] }
  0x22   : > { %v2566_v47 = vpack.i.bf16 %v381_v46, %v380_v42  ;;  %v3577_v56 = vunpack.c.h.bf16 %v879_v53  ;;  %v895_v57 = vunpack.c.l.bf16 %v875_v54  ;;  %v3579_v58 = vunpack.c.h.bf16 %v875_v54  ;;  %v890_v33 = vld [vmem:[%s3567_s30 + $0x3c] sm:$0x1] }
  0x23   : > { %v2626_v49 = vpack.i.bf16 %v382_v48, %v380_v42  ;;  %v2666_v52 = vpack.i.bf16 %v383_v51, %v382_v48  ;;  %v3583_v61 = vunpack.c.l.bf16 %v887_v59  ;;  %v3585_v62 = vunpack.c.h.bf16 %v887_v59 }
  0x24   : > { %v3589_v63 = vpack.i.bf16 %v3577_v56, %v3575_v55  ;;  %v2711_v0 = vpack.i.bf16 %v3579_v58, %v895_v57  ;;  %v3592_v1 = vunpack.c.l.bf16 %v883_v60  ;;  %v3594_v2 = vunpack.c.h.bf16 %v883_v60 }
  0x25   : > { %2457 = vrot.lane.b32.xlu1 %v3506_v30, %s3358_s8  ;;  %2452 = vrot.lane.b32.xlu0 %v3509_v31, %s3358_s8  ;;  %v3601_v5 = vpack.i.bf16 %v3585_v62, %v3583_v61  ;;  %v898_v7 = vunpack.c.l.bf16 %v878_v3  ;;  %v896_v8 = vunpack.c.l.bf16 %v876_v4  ;;  %v902_v19 = vunpack.c.l.bf16 %v882_v9 }
  0x26   : > { %v3605_v6 = vpack.i.bf16 %v3594_v2, %v3592_v1  ;;  %v900_v20 = vunpack.c.l.bf16 %v880_v10  ;;  %v904_v32 = vunpack.c.l.bf16 %v884_v22  ;;  %vm1012_vm0 = vcmask 359745  }
  0x27   : > { %v3612_v17 = vpack.i.bf16 %v898_v7, %v3579_v58  ;;  %v3614_v18 = vpack.i.bf16 %v896_v8, %v895_v57  ;;  %v3627_v29 = vpack.i.bf16 %v902_v19, %v3577_v56 }
  0x28   : > { %v3646_v42 = vpack.i.bf16 %v904_v32, %v3592_v1 }
  0x29   : > { %2467 = vrot.lane.b32.xlu1 %v3514_v34, %s3358_s8  ;;  %2462 = vrot.lane.b32.xlu0 %v3517_v35, %s3358_s8  ;;  %s3368_s8 = smov 44  }
  0x2d   : > { %2477 = vrot.lane.b32.xlu1 %v2436_v24, %s3359_s9  ;;  %2472 = vrot.lane.b32.xlu0 %v2431_v16, %s3359_s9 }
  0x31   : > { %2487 = vrot.lane.b32.xlu1 %v3482_v21, %s3359_s9  ;;  %2482 = vrot.lane.b32.xlu0 %v3472_v15, %s3359_s9 }
  0x35   : > { %2497 = vrot.lane.b32.xlu1 %v3506_v30, %s3359_s9  ;;  %2492 = vrot.lane.b32.xlu0 %v3509_v31, %s3359_s9 }
  0x39   : > { %2507 = vrot.lane.b32.xlu1 %v3514_v34, %s3359_s9  ;;  %2502 = vrot.lane.b32.xlu0 %v3517_v35, %s3359_s9  ;;  %s3369_s9 = smov 48  }
  0x3d   : > { %2517 = vrot.lane.b32.xlu1 %v2516_v40, %s3360_s10  ;;  %2512 = vrot.lane.b32.xlu0 %v2511_v41, %s3360_s10 }
  0x41   : > { %2527 = vrot.lane.b32.xlu1 %v2526_v43, %s3360_s10  ;;  %2522 = vrot.lane.b32.xlu0 %v2521_v44, %s3360_s10  ;;  %v910_v43 = vunpack.c.l.bf16 %v890_v33  ;;  %v2816_v33 = vpack.i.bf16 %v3592_v1, %v3577_v56  ;;  %s3370_s10 = smov 52  }
  0x43   : > { %v3657_v51 = vpack.i.bf16 %v910_v43, %v3585_v62 }
  0x45   : > { %2537 = vrot.lane.b32.xlu1 %v3472_v15, %s3361_s11  ;;  %2532 = vrot.lane.b32.xlu0 %v2436_v24, %s3361_s11 }
  0x49   : > { %2547 = vrot.lane.b32.xlu1 %v3509_v31, %s3361_s11  ;;  %2542 = vrot.lane.b32.xlu0 %v3482_v21, %s3361_s11 }
  0x4d   : > { %2557 = vrot.lane.b32.xlu1 %v3517_v35, %s3361_s11  ;;  %2552 = vrot.lane.b32.xlu0 %v3506_v30, %s3361_s11 }
  0x51   : > { %2567 = vrot.lane.b32.xlu1 %v2566_v47, %s3361_s11  ;;  %2562 = vrot.lane.b32.xlu0 %v3514_v34, %s3361_s11  ;;  %s3371_s11 = smov 56  }
  0x55   : > { %2577 = vrot.lane.b32.xlu1 %v3472_v15, %s3362_s12  ;;  %2572 = vrot.lane.b32.xlu0 %v2436_v24, %s3362_s12 }
  0x59   : > { %2587 = vrot.lane.b32.xlu1 %v3509_v31, %s3362_s12  ;;  %2582 = vrot.lane.b32.xlu0 %v3482_v21, %s3362_s12 }
  0x5d   : > { %2597 = vrot.lane.b32.xlu1 %v3517_v35, %s3362_s12  ;;  %2592 = vrot.lane.b32.xlu0 %v3506_v30, %s3362_s12 }
  0x61   : > { %2607 = vrot.lane.b32.xlu1 %v2566_v47, %s3362_s12  ;;  %2602 = vrot.lane.b32.xlu0 %v3514_v34, %s3362_s12  ;;  %s3372_s12 = smov 60  }
  0x65   : > { %2617 = vrot.lane.b32.xlu1 %v2616_v36, %s3363_s13  ;;  %2612 = vrot.lane.b32.xlu0 %v2611_v37, %s3363_s13 }
  0x69   : > { %2627 = vrot.lane.b32.xlu1 %v2626_v49, %s3363_s13  ;;  %2622 = vrot.lane.b32.xlu0 %v2621_v38, %s3363_s13  ;;  %s323_s13 = sadd.s32 2, %s3340_s18  ;;  %s4412_s18 = smov (!%p336_p9, %s3340_s18), 3 }
  0x6a   : > { %p3812_p8 = scmp.lt.s32.totalorder %s323_s13, 5 }
  0x6c   : > { %s4410_s13 = smov (!%p3812_p8, %s323_s13), 5 }
  0x6d   : > { %2637 = vrot.lane.b32.xlu1 %v3482_v21, %s3364_s15  ;;  %2632 = vrot.lane.b32.xlu0 %v3472_v15, %s3364_s15  ;;  %s2364_s16 = smul.u32 20, %s4410_s13 }
  0x6f   : > { %s330_s17 = sadd.s32 %s2364_s16, %s3451_s26  ;;  %s3382_s16 = smov 100  }
  0x70   : > { %s2294_s25 = sshll.u32 %s330_s17, 2 }
  0x71   : > { %2647 = vrot.lane.b32.xlu1 %v3506_v30, %s3364_s15  ;;  %2642 = vrot.lane.b32.xlu0 %v3509_v31, %s3364_s15  ;;  %s3862_s28 = scalar_lea.vmem %s4390_s2, %s2294_s25 }
  0x75   : > { %2657 = vrot.lane.b32.xlu1 %v3514_v34, %s3364_s15  ;;  %2652 = vrot.lane.b32.xlu0 %v3517_v35, %s3364_s15 }
  0x79   : > { %2667 = vrot.lane.b32.xlu1 %v2666_v52, %s3364_s15  ;;  %2662 = vrot.lane.b32.xlu0 %v2566_v47, %s3364_s15  ;;  %s3373_s15 = smov 64  }
  0x7d   : > { %2677 = vrot.lane.b32.xlu1 %v3482_v21, %s3365_s27  ;;  %2672 = vrot.lane.b32.xlu0 %v3472_v15, %s3365_s27  ;;  %v886_v21 = vld [vmem:[%s3567_s30 + $0x2c] sm:$0x1] }
  0x81   : > { %2687 = vrot.lane.b32.xlu1 %v3506_v30, %s3365_s27  ;;  %2682 = vrot.lane.b32.xlu0 %v3509_v31, %s3365_s27  ;;  %v3630_v30 = vpack.i.bf16 %v900_v20, %v3575_v55  ;;  %v906_v31 = vunpack.c.l.bf16 %v886_v21 }
  0x83   : > { %v3643_v41 = vpack.i.bf16 %v906_v31, %v3594_v2 }
  0x85   : > { %2697 = vrot.lane.b32.xlu1 %v3514_v34, %s3365_s27  ;;  %2692 = vrot.lane.b32.xlu0 %v3517_v35, %s3365_s27  ;;  %v888_v34 = vld [vmem:[%s3567_s30 + $0x34] sm:$0x1] }
  0x86   : > { %v908_v44 = vunpack.c.l.bf16 %v888_v34  ;;  %v2811_v34 = vpack.i.bf16 %v3575_v55, %v3579_v58  ;;  %v2821_v58 = vpack.i.bf16 %v3583_v61, %v3594_v2 }
  0x89   : > { %2707 = vrot.lane.b32.xlu1 %v2666_v52, %s3365_s27  ;;  %2702 = vrot.lane.b32.xlu0 %v2566_v47, %s3365_s27  ;;  %v3660_v52 = vpack.i.bf16 %v908_v44, %v3583_v61 }
  0x8d   : > { %2717 = vrot.lane.b32.xlu1 %v3589_v63, %s3366_s6  ;;  %2712 = vrot.lane.b32.xlu0 %v2711_v0, %s3366_s6 }
  0x8f   : > { %v2443_v11 = vpop.permute.xlu1 %2442  ;;  %v2433_v12 = vpop.permute.xlu0 %2432 }
  0x90   : > { %v2445_v13 = vunpack.i.h.bf16 %v2443_v11  ;;  %v2444_v14 = vunpack.i.l.bf16 %v2443_v11  ;;  %v2435_v15 = vunpack.i.h.bf16 %v2433_v12  ;;  %v2434_v16 = vunpack.i.l.bf16 %v2433_v12 }
  0x91   : > { %2727 = vrot.lane.b32.xlu1 %v3601_v5, %s3366_s6  ;;  %2722 = vrot.lane.b32.xlu0 %v3605_v6, %s3366_s6  ;;  %s3376_s6 = smov 76  }
  0x92   : > { %463 = vst.msk [vmem:[#allocation2 + $0xf] sm:$0xfe] %vm457_vm1, %v2444_v14  ;;  %458 = vst.msk [vmem:[#allocation2 - $0x1] sm:$0xfe] %vm457_vm1, %v2434_v16 }
  0x93   : > { %464 = vst.msk [vmem:[#allocation2 + $0x17] sm:$0x1] %vm459_vm2, %v2445_v13  ;;  %460 = vst.msk [vmem:[#allocation2 + $0x7] sm:$0x1] %vm459_vm2, %v2435_v15  ;;  %v2448_v23 = vpop.permute.xlu1 %2447  ;;  %v2438_v24 = vpop.permute.xlu0 %2437 }
  0x94   : > { %v2450_v25 = vunpack.i.h.bf16 %v2448_v23  ;;  %v2449_v26 = vunpack.i.l.bf16 %v2448_v23  ;;  %v2440_v27 = vunpack.i.h.bf16 %v2438_v24  ;;  %v2439_v28 = vunpack.i.l.bf16 %v2438_v24  ;;  %v3699_v24 = vld [vmem:[%s3567_s30 + $0x40] ss:$8 sps:$4 sm:$0xff]  }
  0x95   : > { %2737 = vrot.lane.b32.xlu1 %v3612_v17, %s3367_s7  ;;  %2732 = vrot.lane.b32.xlu0 %v3614_v18, %s3367_s7 }
  0x96   : > { %466 = vst.msk [vmem:[#allocation2 + $0x1f] sm:$0x1] %vm459_vm2, %v2450_v25  ;;  %462 = vst.msk [vmem:[#allocation2 + $0xf] sm:$0x1] %vm459_vm2, %v2440_v27 }
  0x97   : > { %465 = vst.msk [vmem:[#allocation2 + $0x17] sm:$0xfe] %vm457_vm1, %v2449_v26  ;;  %461 = vst.msk [vmem:[#allocation2 + $0x7] sm:$0xfe] %vm457_vm1, %v2439_v28  ;;  %v2458_v35 = vpop.permute.xlu1 %2457  ;;  %v2453_v36 = vpop.permute.xlu0 %2452 }
  0x98   : > { %v2460_v37 = vunpack.i.h.bf16 %v2458_v35  ;;  %v2459_v38 = vunpack.i.l.bf16 %v2458_v35  ;;  %v2455_v39 = vunpack.i.h.bf16 %v2453_v36  ;;  %v2454_v40 = vunpack.i.l.bf16 %v2453_v36 }
  0x99   : > { %2747 = vrot.lane.b32.xlu1 %v3627_v29, %s3367_s7  ;;  %2742 = vrot.lane.b32.xlu0 %v3630_v30, %s3367_s7  ;;  %v3710_v35 = vunpack.c.l.bf16 %v3699_v24 }
  0x9a   : > { %470 = vst.msk [vmem:[#allocation2 + $0x2f] sm:$0x1] %vm459_vm2, %v2460_v37  ;;  %468 = vst.msk [vmem:[#allocation2 + $0x27] sm:$0x1] %vm459_vm2, %v2455_v39 }
  0x9b   : > { %469 = vst.msk [vmem:[#allocation2 + $0x27] sm:$0xfe] %vm457_vm1, %v2459_v38  ;;  %467 = vst.msk [vmem:[#allocation2 + $0x1f] sm:$0xfe] %vm457_vm1, %v2454_v40  ;;  %v2468_v45 = vpop.permute.xlu1 %2467  ;;  %v2463_v46 = vpop.permute.xlu0 %2462  ;;  %v2826_v55 = vpack.i.bf16 %v3710_v35, %v3585_v62 }
  0x9c   : > { %v2470_v47 = vunpack.i.h.bf16 %v2468_v45  ;;  %v2469_v48 = vunpack.i.l.bf16 %v2468_v45  ;;  %v2465_v49 = vunpack.i.h.bf16 %v2463_v46  ;;  %v2464_v50 = vunpack.i.l.bf16 %v2463_v46 }
  0x9d   : > { %2757 = vrot.lane.b32.xlu1 %v3643_v41, %s3367_s7  ;;  %2752 = vrot.lane.b32.xlu0 %v3646_v42, %s3367_s7 }
  0x9e   : > { %474 = vst.msk [vmem:[#allocation2 + $0x3f] sm:$0x1] %vm459_vm2, %v2470_v47  ;;  %472 = vst.msk [vmem:[#allocation2 + $0x37] sm:$0x1] %vm459_vm2, %v2465_v49  ;;  %vm1078_vm2 = vcmask 392546  }
  0x9f   : > { %473 = vst.msk [vmem:[#allocation2 + $0x37] sm:$0xfe] %vm457_vm1, %v2469_v48  ;;  %471 = vst.msk [vmem:[#allocation2 + $0x2f] sm:$0xfe] %vm457_vm1, %v2464_v50  ;;  %v2478_v53 = vpop.permute.xlu1 %2477  ;;  %v2473_v54 = vpop.permute.xlu0 %2472  ;;  %vm1014_vm1 = vcmask 352576  }
  0xa0   : > { %v2480_v57 = vunpack.i.h.bf16 %v2478_v53  ;;  %v2479_v59 = vunpack.i.l.bf16 %v2478_v53  ;;  %v2475_v60 = vunpack.i.h.bf16 %v2473_v54  ;;  %v2474_v0 = vunpack.i.l.bf16 %v2473_v54  ;;  %v892_v53 = vld [vmem:[%s3567_s30 + $0x44] sm:$0x1] }
  0xa1   : > { %2767 = vrot.lane.b32.xlu1 %v3657_v51, %s3367_s7  ;;  %2762 = vrot.lane.b32.xlu0 %v3660_v52, %s3367_s7  ;;  %s3377_s7 = smov 80  }
  0xa2   : > { %527 = vst.msk [vmem:[#allocation2 + $0x6] sm:$0xfc] %vm523_vm3, %v2479_v59  ;;  %524 = vst.msk [vmem:[#allocation2 - $0x2] sm:$0xfc] %vm523_vm3, %v2474_v0 }
  0xa3   : > { %528 = vst.msk [vmem:[#allocation2 + $0xe] sm:$0x3] %vm525_vm4, %v2480_v57  ;;  %526 = vst.msk [vmem:[#allocation2 + $0x6] sm:$0x3] %vm525_vm4, %v2475_v60  ;;  %v2488_v3 = vpop.permute.xlu1 %2487  ;;  %v2483_v4 = vpop.permute.xlu0 %2482 }
  0xa4   : > { %v2490_v7 = vunpack.i.h.bf16 %v2488_v3  ;;  %v2489_v8 = vunpack.i.l.bf16 %v2488_v3  ;;  %v2485_v9 = vunpack.i.h.bf16 %v2483_v4  ;;  %v2484_v10 = vunpack.i.l.bf16 %v2483_v4 }
  0xa5   : > { %2777 = vrot.lane.b32.xlu1 %v3612_v17, %s3368_s8  ;;  %2772 = vrot.lane.b32.xlu0 %v3614_v18, %s3368_s8  ;;  %v912_v4 = vunpack.c.l.bf16 %v892_v53 }
  0xa6   : > { %532 = vst.msk [vmem:[#allocation2 + $0x1e] sm:$0x3] %vm525_vm4, %v2490_v7  ;;  %530 = vst.msk [vmem:[#allocation2 + $0x16] sm:$0x3] %vm525_vm4, %v2485_v9 }
  0xa7   : > { %531 = vst.msk [vmem:[#allocation2 + $0x16] sm:$0xfc] %vm523_vm3, %v2489_v8  ;;  %529 = vst.msk [vmem:[#allocation2 + $0xe] sm:$0xfc] %vm523_vm3, %v2484_v10  ;;  %v2498_v11 = vpop.permute.xlu1 %2497  ;;  %v2493_v12 = vpop.permute.xlu0 %2492 }
  0xa8   : > { %v2500_v13 = vunpack.i.h.bf16 %v2498_v11  ;;  %v2499_v14 = vunpack.i.l.bf16 %v2498_v11  ;;  %v2495_v15 = vunpack.i.h.bf16 %v2493_v12  ;;  %v2494_v16 = vunpack.i.l.bf16 %v2493_v12 }
  0xa9   : > { %2787 = vrot.lane.b32.xlu1 %v3627_v29, %s3368_s8  ;;  %2782 = vrot.lane.b32.xlu0 %v3630_v30, %s3368_s8 }
  0xaa   : > { %536 = vst.msk [vmem:[#allocation2 + $0x2e] sm:$0x3] %vm525_vm4, %v2500_v13  ;;  %534 = vst.msk [vmem:[#allocation2 + $0x26] sm:$0x3] %vm525_vm4, %v2495_v15  ;;  %v3750_v13 = vpack.i.bf16 %v912_v4, %v3710_v35 }
  0xab   : > { %535 = vst.msk [vmem:[#allocation2 + $0x26] sm:$0xfc] %vm523_vm3, %v2499_v14  ;;  %533 = vst.msk [vmem:[#allocation2 + $0x1e] sm:$0xfc] %vm523_vm3, %v2494_v16  ;;  %v2508_v18 = vpop.permute.xlu1 %2507  ;;  %v2503_v19 = vpop.permute.xlu0 %2502 }
  0xac   : > { %v2510_v20 = vunpack.i.h.bf16 %v2508_v18  ;;  %v2509_v21 = vunpack.i.l.bf16 %v2508_v18  ;;  %v2505_v22 = vunpack.i.h.bf16 %v2503_v19  ;;  %v2504_v23 = vunpack.i.l.bf16 %v2503_v19 }
  0xad   : > { %2797 = vrot.lane.b32.xlu1 %v3643_v41, %s3368_s8  ;;  %2792 = vrot.lane.b32.xlu0 %v3646_v42, %s3368_s8 }
  0xae   : > { %540 = vst.msk [vmem:[#allocation2 + $0x3e] sm:$0x3] %vm525_vm4, %v2510_v20  ;;  %538 = vst.msk [vmem:[#allocation2 + $0x36] sm:$0x3] %vm525_vm4, %v2505_v22  ;;  %vm1121_vm4 = vcmask 425344  }
  0xaf   : > { %539 = vst.msk [vmem:[#allocation2 + $0x36] sm:$0xfc] %vm523_vm3, %v2509_v21  ;;  %537 = vst.msk [vmem:[#allocation2 + $0x2e] sm:$0xfc] %vm523_vm3, %v2504_v23  ;;  %v2518_v25 = vpop.permute.xlu1 %2517  ;;  %v2513_v26 = vpop.permute.xlu0 %2512  ;;  %vm1080_vm3 = vcmask 386400  }
  0xb0   : > { %v2520_v27 = vunpack.i.h.bf16 %v2518_v25  ;;  %v2519_v28 = vunpack.i.l.bf16 %v2518_v25  ;;  %v2515_v31 = vunpack.i.h.bf16 %v2513_v26  ;;  %v2514_v32 = vunpack.i.l.bf16 %v2513_v26 }
  0xb1   : > { %2807 = vrot.lane.b32.xlu1 %v3657_v51, %s3368_s8  ;;  %2802 = vrot.lane.b32.xlu0 %v3660_v52, %s3368_s8  ;;  %s3378_s8 = smov 84  }
  0xb2   : > { %568 = vst.msk [vmem:[#allocation2 + $0x8] sm:$0xff] %vm566_vm5, %v2515_v31  ;;  %567 = vst.msk [vmem:[#allocation2] sm:$0xff] %vm566_vm5, %v2514_v32 }
  0xb3   : > { %569 = vst.msk [vmem:[#allocation2 + $0x10] sm:$0xff] %vm566_vm5, %v2519_v28  ;;  %570 = vst.msk [vmem:[#allocation2 + $0x18] sm:$0xff] %vm566_vm5, %v2520_v27  ;;  %v2528_v36 = vpop.permute.xlu1 %2527  ;;  %v2523_v37 = vpop.permute.xlu0 %2522 }
  0xb4   : > { %v2530_v38 = vunpack.i.h.bf16 %v2528_v36  ;;  %v2529_v39 = vunpack.i.l.bf16 %v2528_v36  ;;  %v2525_v40 = vunpack.i.h.bf16 %v2523_v37  ;;  %v2524_v56 = vunpack.i.l.bf16 %v2523_v37 }
  0xb5   : > { %2817 = vrot.lane.b32.xlu1 %v2816_v33, %s3369_s9  ;;  %2812 = vrot.lane.b32.xlu0 %v2811_v34, %s3369_s9 }
  0xb6   : > { %571 = vst.msk [vmem:[#allocation2 + $0x20] sm:$0xff] %vm566_vm5, %v2524_v56  ;;  %572 = vst.msk [vmem:[#allocation2 + $0x28] sm:$0xff] %vm566_vm5, %v2525_v40 }
  0xb7   : > { %573 = vst.msk [vmem:[#allocation2 + $0x30] sm:$0xff] %vm566_vm5, %v2529_v39  ;;  %574 = vst.msk [vmem:[#allocation2 + $0x38] sm:$0xff] %vm566_vm5, %v2530_v38  ;;  %v2538_v1 = vpop.permute.xlu1 %2537  ;;  %v2533_v43 = vpop.permute.xlu0 %2532  ;;  %vm1179_vm5 = vcmask 458145  }
  0xb8   : > { %v2540_v44 = vunpack.i.h.bf16 %v2538_v1  ;;  %v2539_v45 = vunpack.i.l.bf16 %v2538_v1  ;;  %v2535_v46 = vunpack.i.h.bf16 %v2533_v43  ;;  %v2534_v47 = vunpack.i.l.bf16 %v2533_v43 }
  0xb9   : > { %2827 = vrot.lane.b32.xlu1 %v2826_v55, %s3369_s9  ;;  %2822 = vrot.lane.b32.xlu0 %v2821_v58, %s3369_s9  ;;  %s3379_s9 = smov 88  }
  0xba   : > { %628 = vst.msk [vmem:[#allocation2 + $0x7] sm:$0xfe] %vm624_vm6, %v2539_v45  ;;  %625 = vst.msk [vmem:[#allocation2 - $0x1] sm:$0xfe] %vm624_vm6, %v2534_v47 }
  0xbb   : > { %629 = vst.msk [vmem:[#allocation2 + $0xf] sm:$0x1] %vm626_vm7, %v2540_v44  ;;  %627 = vst.msk [vmem:[#allocation2 + $0x7] sm:$0x1] %vm626_vm7, %v2535_v46  ;;  %v2548_v61 = vpop.permute.xlu1 %2547  ;;  %v2543_v62 = vpop.permute.xlu0 %2542  ;;  %v913_v46 = vunpack.c.h.bf16 %v3699_v24 }
  0xbc   : > { %v2550_v2 = vunpack.i.h.bf16 %v2548_v61  ;;  %v2549_v48 = vunpack.i.l.bf16 %v2548_v61  ;;  %v2545_v49 = vunpack.i.h.bf16 %v2543_v62  ;;  %v2544_v50 = vunpack.i.l.bf16 %v2543_v62 }
  0xbd   : > { %2837 = vrot.lane.b32.xlu1 %v3630_v30, %s3370_s10  ;;  %2832 = vrot.lane.b32.xlu0 %v3612_v17, %s3370_s10 }
  0xbe   : > { %632 = vst.msk [vmem:[#allocation2 + $0x17] sm:$0xfe] %vm624_vm6, %v2549_v48  ;;  %630 = vst.msk [vmem:[#allocation2 + $0xf] sm:$0xfe] %vm624_vm6, %v2544_v50  ;;  %v2926_v50 = vpack.i.bf16 %v913_v46, %v3710_v35 }
  0xbf   : > { %633 = vst.msk [vmem:[#allocation2 + $0x1f] sm:$0x1] %vm626_vm7, %v2550_v2  ;;  %631 = vst.msk [vmem:[#allocation2 + $0x17] sm:$0x1] %vm626_vm7, %v2545_v49  ;;  %v2558_v54 = vpop.permute.xlu1 %2557  ;;  %v2553_v57 = vpop.permute.xlu0 %2552 }
  0xc0   : > { %v2560_v59 = vunpack.i.h.bf16 %v2558_v54  ;;  %v2559_v60 = vunpack.i.l.bf16 %v2558_v54  ;;  %v2555_v0 = vunpack.i.h.bf16 %v2553_v57  ;;  %v2554_v3 = vunpack.i.l.bf16 %v2553_v57 }
  0xc1   : > { %2847 = vrot.lane.b32.xlu1 %v3646_v42, %s3370_s10  ;;  %2842 = vrot.lane.b32.xlu0 %v3627_v29, %s3370_s10 }
  0xc2   : > { %636 = vst.msk [vmem:[#allocation2 + $0x27] sm:$0xfe] %vm624_vm6, %v2559_v60  ;;  %634 = vst.msk [vmem:[#allocation2 + $0x1f] sm:$0xfe] %vm624_vm6, %v2554_v3 }
  0xc3   : > { %637 = vst.msk [vmem:[#allocation2 + $0x2f] sm:$0x1] %vm626_vm7, %v2560_v59  ;;  %635 = vst.msk [vmem:[#allocation2 + $0x27] sm:$0x1] %vm626_vm7, %v2555_v0  ;;  %v2568_v7 = vpop.permute.xlu1 %2567  ;;  %v2563_v8 = vpop.permute.xlu0 %2562 }
  0xc4   : > { %v2570_v9 = vunpack.i.h.bf16 %v2568_v7  ;;  %v2569_v10 = vunpack.i.l.bf16 %v2568_v7  ;;  %v2565_v11 = vunpack.i.h.bf16 %v2563_v8  ;;  %v2564_v12 = vunpack.i.l.bf16 %v2563_v8  ;;  %v894_v7 = vld [vmem:[%s3567_s30 + $0x4c] sm:$0x1]  ;;  %s3375_s30 = smov 72  }
  0xc5   : > { %2857 = vrot.lane.b32.xlu1 %v3660_v52, %s3370_s10  ;;  %2852 = vrot.lane.b32.xlu0 %v3643_v41, %s3370_s10 }
  0xc6   : > { %640 = vst.msk [vmem:[#allocation2 + $0x37] sm:$0xfe] %vm624_vm6, %v2569_v10  ;;  %638 = vst.msk [vmem:[#allocation2 + $0x2f] sm:$0xfe] %vm624_vm6, %v2564_v12  ;;  %vm1181_vm6 = vcmask 450976  }
  0xc7   : > { %641 = vst.msk [vmem:[#allocation2 + $0x3f] sm:$0x1] %vm626_vm7, %v2570_v9  ;;  %639 = vst.msk [vmem:[#allocation2 + $0x37] sm:$0x1] %vm626_vm7, %v2565_v11  ;;  %v2578_v14 = vpop.permute.xlu1 %2577  ;;  %v2573_v15 = vpop.permute.xlu0 %2572  ;;  %vm1245_vm7 = vcmask 490946  }
  0xc8   : > { %v2580_v16 = vunpack.i.h.bf16 %v2578_v14  ;;  %v2579_v18 = vunpack.i.l.bf16 %v2578_v14  ;;  %v2575_v19 = vunpack.i.h.bf16 %v2573_v15  ;;  %v2574_v20 = vunpack.i.l.bf16 %v2573_v15 }
  0xc9   : > { %2867 = vrot.lane.b32.xlu1 %v3750_v13, %s3370_s10  ;;  %2862 = vrot.lane.b32.xlu0 %v3657_v51, %s3370_s10  ;;  %v914_v15 = vunpack.c.l.bf16 %v894_v7  ;;  %s3380_s10 = smov 92  }
  0xca   : > { %694 = vst.msk [vmem:[#allocation2 + $0x6] sm:$0xfc] %vm690_vm8, %v2579_v18  ;;  %691 = vst.msk [vmem:[#allocation2 - $0x2] sm:$0xfc] %vm690_vm8, %v2574_v20 }
  0xcb   : > { %695 = vst.msk [vmem:[#allocation2 + $0xe] sm:$0x3] %vm692_vm9, %v2580_v16  ;;  %693 = vst.msk [vmem:[#allocation2 + $0x6] sm:$0x3] %vm692_vm9, %v2575_v19  ;;  %v2588_v21 = vpop.permute.xlu1 %2587  ;;  %v2583_v22 = vpop.permute.xlu0 %2582 }
  0xcc   : > { %v2590_v23 = vunpack.i.h.bf16 %v2588_v21  ;;  %v2589_v25 = vunpack.i.l.bf16 %v2588_v21  ;;  %v2585_v26 = vunpack.i.h.bf16 %v2583_v22  ;;  %v2584_v27 = vunpack.i.l.bf16 %v2583_v22 }
  0xcd   : > { %2877 = vrot.lane.b32.xlu1 %v3630_v30, %s3371_s11  ;;  %2872 = vrot.lane.b32.xlu0 %v3612_v17, %s3371_s11 }
  0xce   : > { %698 = vst.msk [vmem:[#allocation2 + $0x16] sm:$0xfc] %vm690_vm8, %v2589_v25  ;;  %696 = vst.msk [vmem:[#allocation2 + $0xe] sm:$0xfc] %vm690_vm8, %v2584_v27 }
  0xcf   : > { %699 = vst.msk [vmem:[#allocation2 + $0x1e] sm:$0x3] %vm692_vm9, %v2590_v23  ;;  %697 = vst.msk [vmem:[#allocation2 + $0x16] sm:$0x3] %vm692_vm9, %v2585_v26  ;;  %v2598_v28 = vpop.permute.xlu1 %2597  ;;  %v2593_v31 = vpop.permute.xlu0 %2592  ;;  %v3844_v23 = vpack.i.bf16 %v914_v15, %v913_v46  ;;  %v1441_v15 = vld [vmem:[%s3862_s28 + $0x2c] sm:$0x1] }
  0xd0   : > { %v2600_v32 = vunpack.i.h.bf16 %v2598_v28  ;;  %v2599_v33 = vunpack.i.l.bf16 %v2598_v28  ;;  %v2595_v34 = vunpack.i.h.bf16 %v2593_v31  ;;  %v2594_v36 = vunpack.i.l.bf16 %v2593_v31 }
  0xd1   : > { %2887 = vrot.lane.b32.xlu1 %v3646_v42, %s3371_s11  ;;  %2882 = vrot.lane.b32.xlu0 %v3627_v29, %s3371_s11 }
  0xd2   : > { %702 = vst.msk [vmem:[#allocation2 + $0x26] sm:$0xfc] %vm690_vm8, %v2599_v33  ;;  %700 = vst.msk [vmem:[#allocation2 + $0x1e] sm:$0xfc] %vm690_vm8, %v2594_v36 }
  0xd3   : > { %703 = vst.msk [vmem:[#allocation2 + $0x2e] sm:$0x3] %vm692_vm9, %v2600_v32  ;;  %701 = vst.msk [vmem:[#allocation2 + $0x26] sm:$0x3] %vm692_vm9, %v2595_v34  ;;  %v2608_v17 = vpop.permute.xlu1 %2607  ;;  %v2603_v37 = vpop.permute.xlu0 %2602 }
  0xd4   : > { %v2610_v38 = vunpack.i.h.bf16 %v2608_v17  ;;  %v2609_v39 = vunpack.i.l.bf16 %v2608_v17  ;;  %v2605_v40 = vunpack.i.h.bf16 %v2603_v37  ;;  %v2604_v56 = vunpack.i.l.bf16 %v2603_v37 }
  0xd5   : > { %2897 = vrot.lane.b32.xlu1 %v3660_v52, %s3371_s11  ;;  %2892 = vrot.lane.b32.xlu0 %v3643_v41, %s3371_s11 }
  0xd6   : > { %706 = vst.msk [vmem:[#allocation2 + $0x36] sm:$0xfc] %vm690_vm8, %v2609_v39  ;;  %704 = vst.msk [vmem:[#allocation2 + $0x2e] sm:$0xfc] %vm690_vm8, %v2604_v56  ;;  %vm1247_vm8 = vcmask 484800  }
  0xd7   : > { %707 = vst.msk [vmem:[#allocation2 + $0x3e] sm:$0x3] %vm692_vm9, %v2610_v38  ;;  %705 = vst.msk [vmem:[#allocation2 + $0x36] sm:$0x3] %vm692_vm9, %v2605_v40  ;;  %v2618_v55 = vpop.permute.xlu1 %2617  ;;  %v2613_v58 = vpop.permute.xlu0 %2612  ;;  %vm1288_vm9 = vcmask 523744  }
  0xd8   : > { %v2620_v1 = vunpack.i.h.bf16 %v2618_v55  ;;  %v2619_v43 = vunpack.i.l.bf16 %v2618_v55  ;;  %v2615_v44 = vunpack.i.h.bf16 %v2613_v58  ;;  %v2614_v45 = vunpack.i.l.bf16 %v2613_v58 }
  0xd9   : > { %2907 = vrot.lane.b32.xlu1 %v3750_v13, %s3371_s11  ;;  %2902 = vrot.lane.b32.xlu0 %v3657_v51, %s3371_s11  ;;  %s3381_s11 = smov 96  }
  0xda   : > { %735 = vst.msk [vmem:[#allocation2 + $0x8] sm:$0xff] %vm733_vm10, %v2615_v44  ;;  %734 = vst.msk [vmem:[#allocation2] sm:$0xff] %vm733_vm10, %v2614_v45 }
  0xdb   : > { %736 = vst.msk [vmem:[#allocation2 + $0x10] sm:$0xff] %vm733_vm10, %v2619_v43  ;;  %737 = vst.msk [vmem:[#allocation2 + $0x18] sm:$0xff] %vm733_vm10, %v2620_v1  ;;  %v2628_v47 = vpop.permute.xlu1 %2627  ;;  %v2623_v61 = vpop.permute.xlu0 %2622  ;;  %v1438_v1 = vld [vmem:[%s3862_s28 + $0x20] ss:$8 sps:$4 sm:$0xff]  }
  0xdc   : > { %v2630_v62 = vunpack.i.h.bf16 %v2628_v47  ;;  %v2629_v2 = vunpack.i.l.bf16 %v2628_v47  ;;  %v2625_v48 = vunpack.i.h.bf16 %v2623_v61  ;;  %v2624_v49 = vunpack.i.l.bf16 %v2623_v61  ;;  %v3874_v43 = vld [vmem:[%s3862_s28] ss:$8 sps:$4 sm:$0xff]  }
  0xdd   : > { %2917 = vrot.lane.b32.xlu1 %v3605_v6, %s3372_s12  ;;  %2912 = vrot.lane.b32.xlu0 %v3589_v63, %s3372_s12  ;;  %v3884_v44 = vunpack.c.l.bf16 %v1438_v1  ;;  %v3886_v45 = vunpack.c.h.bf16 %v1438_v1 }
  0xde   : > { %738 = vst.msk [vmem:[#allocation2 + $0x20] sm:$0xff] %vm733_vm10, %v2624_v49  ;;  %739 = vst.msk [vmem:[#allocation2 + $0x28] sm:$0xff] %vm733_vm10, %v2625_v48  ;;  %v1434_v48 = vld [vmem:[%s3862_s28 + $0x10] ss:$8 sps:$4 sm:$0xff]  }
  0xdf   : > { %740 = vst.msk [vmem:[#allocation2 + $0x30] sm:$0xff] %vm733_vm10, %v2629_v2  ;;  %741 = vst.msk [vmem:[#allocation2 + $0x38] sm:$0xff] %vm733_vm10, %v2630_v62  ;;  %v2638_v53 = vpop.permute.xlu1 %2637  ;;  %v2633_v54 = vpop.permute.xlu0 %2632  ;;  %v1442_v2 = vld [vmem:[%s3862_s28 + $0x30] ss:$8 sps:$4 sm:$0xff]   ;;  %vm1346_vm10 = vcmask 556545  }
  0xe0   : > { %v2640_v6 = vunpack.i.h.bf16 %v2638_v53  ;;  %v2639_v57 = vunpack.i.l.bf16 %v2638_v53  ;;  %v2635_v63 = vunpack.i.h.bf16 %v2633_v54  ;;  %v2634_v59 = vunpack.i.l.bf16 %v2633_v54 }
  0xe1   : > { %2927 = vrot.lane.b32.xlu1 %v2926_v50, %s3372_s12  ;;  %2922 = vrot.lane.b32.xlu0 %v3601_v5, %s3372_s12  ;;  %v3904_v53 = vpack.i.bf16 %v3886_v45, %v3884_v44 }
  0xe2   : > { %795 = vst.msk [vmem:[#allocation2 + $0x7] sm:$0xfe] %vm791_vm11, %v2639_v57  ;;  %792 = vst.msk [vmem:[#allocation2 - $0x1] sm:$0xfe] %vm791_vm11, %v2634_v59  ;;  %v3915_v59 = vunpack.c.h.bf16 %v1442_v2 }
  0xe3   : > { %796 = vst.msk [vmem:[#allocation2 + $0xf] sm:$0x1] %vm793_vm12, %v2640_v6  ;;  %794 = vst.msk [vmem:[#allocation2 + $0x7] sm:$0x1] %vm793_vm12, %v2635_v63  ;;  %v2648_v35 = vpop.permute.xlu1 %2647  ;;  %v2643_v60 = vpop.permute.xlu0 %2642  ;;  %v3913_v63 = vunpack.c.l.bf16 %v1442_v2 }
  0xe4   : > { %v2650_v0 = vunpack.i.h.bf16 %v2648_v35  ;;  %v2649_v3 = vunpack.i.l.bf16 %v2648_v35  ;;  %v2645_v4 = vunpack.i.h.bf16 %v2643_v60  ;;  %v2644_v5 = vunpack.i.l.bf16 %v2643_v60 }
  0xe5   : > { %2937 = vrot.lane.b32.xlu1 %v3627_v29, %s3373_s15  ;;  %2932 = vrot.lane.b32.xlu0 %v3630_v30, %s3373_s15  ;;  %v3917_v35 = vunpack.c.l.bf16 %v1434_v48  ;;  %v3919_v60 = vunpack.c.h.bf16 %v1434_v48 }
  0xe6   : > { %799 = vst.msk [vmem:[#allocation2 + $0x17] sm:$0xfe] %vm791_vm11, %v2649_v3  ;;  %797 = vst.msk [vmem:[#allocation2 + $0xf] sm:$0xfe] %vm791_vm11, %v2644_v5  ;;  %v1431_v3 = vld [vmem:[%s3862_s28 + $0x4] sm:$0x1] }
  0xe7   : > { %800 = vst.msk [vmem:[#allocation2 + $0x1f] sm:$0x1] %vm793_vm12, %v2650_v0  ;;  %798 = vst.msk [vmem:[#allocation2 + $0x17] sm:$0x1] %vm793_vm12, %v2645_v4  ;;  %v2658_v8 = vpop.permute.xlu1 %2657  ;;  %v2653_v9 = vpop.permute.xlu0 %2652  ;;  %v1433_v0 = vld [vmem:[%s3862_s28 + $0xc] sm:$0x1] }
  0xe8   : > { %v2660_v10 = vunpack.i.h.bf16 %v2658_v8  ;;  %v2659_v11 = vunpack.i.l.bf16 %v2658_v8  ;;  %v2655_v12 = vunpack.i.h.bf16 %v2653_v9  ;;  %v2654_v14 = vunpack.i.l.bf16 %v2653_v9 }
  0xe9   : > { %2947 = vrot.lane.b32.xlu1 %v3657_v51, %s3373_s15  ;;  %2942 = vrot.lane.b32.xlu0 %v3660_v52, %s3373_s15 }
  0xea   : > { %803 = vst.msk [vmem:[#allocation2 + $0x27] sm:$0xfe] %vm791_vm11, %v2659_v11  ;;  %801 = vst.msk [vmem:[#allocation2 + $0x1f] sm:$0xfe] %vm791_vm11, %v2654_v14  ;;  %v3934_v11 = vpack.i.bf16 %v3919_v60, %v3917_v35  ;;  %v1451_v14 = vunpack.c.l.bf16 %v1431_v3 }
  0xeb   : > { %804 = vst.msk [vmem:[#allocation2 + $0x2f] sm:$0x1] %vm793_vm12, %v2660_v10  ;;  %802 = vst.msk [vmem:[#allocation2 + $0x27] sm:$0x1] %vm793_vm12, %v2655_v12  ;;  %v2668_v16 = vpop.permute.xlu1 %2667  ;;  %v2663_v18 = vpop.permute.xlu0 %2662  ;;  %v3930_v10 = vpack.i.bf16 %v3915_v59, %v3913_v63  ;;  %v1453_v12 = vunpack.c.l.bf16 %v1433_v0 }
  0xec   : > { %v2670_v19 = vunpack.i.h.bf16 %v2668_v16  ;;  %v2669_v20 = vunpack.i.l.bf16 %v2668_v16  ;;  %v2665_v21 = vunpack.i.h.bf16 %v2663_v18  ;;  %v2664_v22 = vunpack.i.l.bf16 %v2663_v18  ;;  %v1439_v16 = vld [vmem:[%s3862_s28 + $0x24] sm:$0x1] }
  0xed   : > { %2957 = vrot.lane.b32.xlu1 %v3643_v41, %s3373_s15  ;;  %2952 = vrot.lane.b32.xlu0 %v3646_v42, %s3373_s15 }
  0xee   : > { %807 = vst.msk [vmem:[#allocation2 + $0x37] sm:$0xfe] %vm791_vm11, %v2669_v20  ;;  %805 = vst.msk [vmem:[#allocation2 + $0x2f] sm:$0xfe] %vm791_vm11, %v2664_v22  ;;  %vm1348_vm11 = vcmask 549376  }
  0xef   : > { %808 = vst.msk [vmem:[#allocation2 + $0x3f] sm:$0x1] %vm793_vm12, %v2670_v19  ;;  %806 = vst.msk [vmem:[#allocation2 + $0x37] sm:$0x1] %vm793_vm12, %v2665_v21  ;;  %v2678_v25 = vpop.permute.xlu1 %2677  ;;  %v2673_v26 = vpop.permute.xlu0 %2672  ;;  %vm1412_vm12 = vcmask 589346  }
  0xf0   : > { %v2680_v27 = vunpack.i.h.bf16 %v2678_v25  ;;  %v2679_v28 = vunpack.i.l.bf16 %v2678_v25  ;;  %v2675_v31 = vunpack.i.h.bf16 %v2673_v26  ;;  %v2674_v32 = vunpack.i.l.bf16 %v2673_v26 }
  0xf1   : > { %2967 = vrot.lane.b32.xlu1 %v3844_v23, %s3373_s15  ;;  %2962 = vrot.lane.b32.xlu0 %v3750_v13, %s3373_s15 }
  0xf2   : > { %861 = vst.msk [vmem:[#allocation2 + $0x6] sm:$0xfc] %vm857_vm13, %v2679_v28  ;;  %858 = vst.msk [vmem:[#allocation2 - $0x2] sm:$0xfc] %vm857_vm13, %v2674_v32  ;;  %v1459_v28 = vunpack.c.l.bf16 %v1439_v16  ;;  %v1435_v32 = vld [vmem:[%s3862_s28 + $0x14] sm:$0x1] }
  0xf3   : > { %862 = vst.msk [vmem:[#allocation2 + $0xe] sm:$0x3] %vm859_vm14, %v2680_v27  ;;  %860 = vst.msk [vmem:[#allocation2 + $0x6] sm:$0x3] %vm859_vm14, %v2675_v31  ;;  %v2688_v24 = vpop.permute.xlu1 %2687  ;;  %v2683_v33 = vpop.permute.xlu0 %2682  ;;  %v1461_v27 = vunpack.c.l.bf16 %v1441_v15  ;;  %v1437_v31 = vld [vmem:[%s3862_s28 + $0x1c] sm:$0x1] }
  0xf4   : > { %v2690_v34 = vunpack.i.h.bf16 %v2688_v24  ;;  %v2689_v36 = vunpack.i.l.bf16 %v2688_v24  ;;  %v2685_v17 = vunpack.i.h.bf16 %v2683_v33  ;;  %v2684_v37 = vunpack.i.l.bf16 %v2683_v33 }
  0xf5   : > { %2977 = vrot.lane.b32.xlu1 %v3627_v29, %s3374_s29  ;;  %2972 = vrot.lane.b32.xlu0 %v3630_v30, %s3374_s29 }
  0xf6   : > { %865 = vst.msk [vmem:[#allocation2 + $0x16] sm:$0xfc] %vm857_vm13, %v2689_v36  ;;  %863 = vst.msk [vmem:[#allocation2 + $0xe] sm:$0xfc] %vm857_vm13, %v2684_v37 }
  0xf7   : > { %866 = vst.msk [vmem:[#allocation2 + $0x1e] sm:$0x3] %vm859_vm14, %v2690_v34  ;;  %864 = vst.msk [vmem:[#allocation2 + $0x16] sm:$0x3] %vm859_vm14, %v2685_v17  ;;  %v2698_v38 = vpop.permute.xlu1 %2697  ;;  %v2693_v39 = vpop.permute.xlu0 %2692 }
  0xf8   : > { %v2700_v40 = vunpack.i.h.bf16 %v2698_v38  ;;  %v2699_v56 = vunpack.i.l.bf16 %v2698_v38  ;;  %v2695_v55 = vunpack.i.h.bf16 %v2693_v39  ;;  %v2694_v58 = vunpack.i.l.bf16 %v2693_v39 }
  0xf9   : > { %2987 = vrot.lane.b32.xlu1 %v3657_v51, %s3374_s29  ;;  %2982 = vrot.lane.b32.xlu0 %v3660_v52, %s3374_s29  ;;  %v1450_v51 = vunpack.c.l.bf16 %v3874_v43  ;;  %v3890_v52 = vunpack.c.h.bf16 %v3874_v43  ;;  %v3962_v38 = vpack.i.bf16 %v1461_v27, %v3886_v45  ;;  %v3965_v39 = vpack.i.bf16 %v1459_v28, %v3884_v44 }
  0xfa   : > { %869 = vst.msk [vmem:[#allocation2 + $0x26] sm:$0xfc] %vm857_vm13, %v2699_v56  ;;  %867 = vst.msk [vmem:[#allocation2 + $0x1e] sm:$0xfc] %vm857_vm13, %v2694_v58  ;;  %v1455_v56 = vunpack.c.l.bf16 %v1435_v32  ;;  %v1443_v58 = vld [vmem:[%s3862_s28 + $0x34] sm:$0x1] }
  0xfb   : > { %870 = vst.msk [vmem:[#allocation2 + $0x2e] sm:$0x3] %vm859_vm14, %v2700_v40  ;;  %868 = vst.msk [vmem:[#allocation2 + $0x26] sm:$0x3] %vm859_vm14, %v2695_v55  ;;  %v2708_v29 = vpop.permute.xlu1 %2707  ;;  %v2703_v30 = vpop.permute.xlu0 %2702  ;;  %v3945_v25 = vpack.i.bf16 %v1453_v12, %v3890_v52  ;;  %v3949_v26 = vpack.i.bf16 %v1451_v14, %v1450_v51  ;;  %v1457_v40 = vunpack.c.l.bf16 %v1437_v31  ;;  %v1445_v55 = vld [vmem:[%s3862_s28 + $0x3c] sm:$0x1]  ;;  %v1463_v2 = vunpack.c.l.bf16 %v1443_v58 }
  0xfc   : > { %v2710_v46 = vunpack.i.h.bf16 %v2708_v29  ;;  %v2709_v47 = vunpack.i.l.bf16 %v2708_v29  ;;  %v2705_v61 = vunpack.i.h.bf16 %v2703_v30  ;;  %v2704_v62 = vunpack.i.l.bf16 %v2703_v30 }
  0xfd   : > { %2997 = vrot.lane.b32.xlu1 %v3643_v41, %s3374_s29  ;;  %2992 = vrot.lane.b32.xlu0 %v3646_v42, %s3374_s29  ;;  %v3011_v41 = vpack.i.bf16 %v3890_v52, %v1450_v51  ;;  %v3111_v58 = vpack.i.bf16 %v3917_v35, %v3890_v52 }
  0xfe   : > { %873 = vst.msk [vmem:[#allocation2 + $0x36] sm:$0xfc] %vm857_vm13, %v2709_v47  ;;  %871 = vst.msk [vmem:[#allocation2 + $0x2e] sm:$0xfc] %vm857_vm13, %v2704_v62  ;;  %v3978_v47 = vpack.i.bf16 %v1457_v40, %v3919_v60  ;;  %v1465_v62 = vunpack.c.l.bf16 %v1445_v55  ;;  %v3116_v55 = vpack.i.bf16 %v3913_v63, %v3886_v45  ;;  %vm1414_vm13 = vcmask 583200  }
  0xff   : > { %874 = vst.msk [vmem:[#allocation2 + $0x3e] sm:$0x3] %vm859_vm14, %v2710_v46  ;;  %872 = vst.msk [vmem:[#allocation2 + $0x36] sm:$0x3] %vm859_vm14, %v2705_v61  ;;  %v2718_v49 = vpop.permute.xlu1 %2717  ;;  %v2713_v50 = vpop.permute.xlu0 %2712  ;;  %v3981_v61 = vpack.i.bf16 %v1455_v56, %v3917_v35  ;;  %vm2072_vm14 = vcmask 1045504  }
 0x100   : > { %v2720_v42 = vunpack.i.h.bf16 %v2718_v49  ;;  %v2719_v54 = vunpack.i.l.bf16 %v2718_v49  ;;  %v2715_v6 = vunpack.i.h.bf16 %v2713_v50  ;;  %v2714_v57 = vunpack.i.l.bf16 %v2713_v50 }
 0x101   : > { %3007 = vrot.lane.b32.xlu1 %v3844_v23, %s3374_s29  ;;  %3002 = vrot.lane.b32.xlu0 %v3750_v13, %s3374_s29 }
 0x102   : > { %949 = vst.msk [vmem:[#allocation2 + $0x8] sm:$0xff] %vm947_vm15, %v2715_v6  ;;  %948 = vst.msk [vmem:[#allocation2] sm:$0xff] %vm947_vm15, %v2714_v57  ;;  %v3992_v6 = vpack.i.bf16 %v1465_v62, %v3915_v59  ;;  %v3995_v57 = vpack.i.bf16 %v1463_v2, %v3913_v63  ;;  %v3121_v63 = vpack.i.bf16 %v3884_v44, %v3919_v60 }
 0x103   : > { %950 = vst.msk [vmem:[#allocation2 + $0x10] sm:$0xff] %vm947_vm15, %v2719_v54  ;;  %951 = vst.msk [vmem:[#allocation2 + $0x18] sm:$0xff] %vm947_vm15, %v2720_v42  ;;  %v2728_v4 = vpop.permute.xlu1 %2727  ;;  %v2723_v13 = vpop.permute.xlu0 %2722 }
 0x104   : > { %v2730_v5 = vunpack.i.h.bf16 %v2728_v4  ;;  %v2729_v7 = vunpack.i.l.bf16 %v2728_v4  ;;  %v2725_v8 = vunpack.i.h.bf16 %v2723_v13  ;;  %v2724_v9 = vunpack.i.l.bf16 %v2723_v13 }
 0x105   : > { %3017 = vrot.lane.b32.xlu1 %v3904_v53, %s3375_s30  ;;  %3012 = vrot.lane.b32.xlu0 %v3011_v41, %s3375_s30 }
 0x106   : > { %952 = vst.msk [vmem:[#allocation2 + $0x20] sm:$0xff] %vm947_vm15, %v2724_v9  ;;  %953 = vst.msk [vmem:[#allocation2 + $0x28] sm:$0xff] %vm947_vm15, %v2725_v8 }
 0x107   : > { %954 = vst.msk [vmem:[#allocation2 + $0x30] sm:$0xff] %vm947_vm15, %v2729_v7  ;;  %955 = vst.msk [vmem:[#allocation2 + $0x38] sm:$0xff] %vm947_vm15, %v2730_v5  ;;  %v2738_v18 = vpop.permute.xlu1 %2737  ;;  %v2733_v19 = vpop.permute.xlu0 %2732  ;;  %vm1502_vm15 = vcmask 622144  }
 0x108   : > { %v2740_v20 = vunpack.i.h.bf16 %v2738_v18  ;;  %v2739_v21 = vunpack.i.l.bf16 %v2738_v18  ;;  %v2735_v22 = vunpack.i.h.bf16 %v2733_v19  ;;  %v2734_v23 = vunpack.i.l.bf16 %v2733_v19 }
 0x109   : > { %3027 = vrot.lane.b32.xlu1 %v3930_v10, %s3375_s30  ;;  %3022 = vrot.lane.b32.xlu0 %v3934_v11, %s3375_s30 }
 0x10a   : > { %1016 = vst.msk [vmem:[#allocation2 + $0x7] sm:$0xfe] %vm1012_vm0, %v2739_v21  ;;  %1013 = vst.msk [vmem:[#allocation2 - $0x1] sm:$0xfe] %vm1012_vm0, %v2734_v23 }
 0x10b   : > { %1017 = vst.msk [vmem:[#allocation2 + $0xf] sm:$0x1] %vm1014_vm1, %v2740_v20  ;;  %1015 = vst.msk [vmem:[#allocation2 + $0x7] sm:$0x1] %vm1014_vm1, %v2735_v22  ;;  %v2748_v24 = vpop.permute.xlu1 %2747  ;;  %v2743_v33 = vpop.permute.xlu0 %2742 }
 0x10c   : > { %v2750_v34 = vunpack.i.h.bf16 %v2748_v24  ;;  %v2749_v36 = vunpack.i.l.bf16 %v2748_v24  ;;  %v2745_v17 = vunpack.i.h.bf16 %v2743_v33  ;;  %v2744_v37 = vunpack.i.l.bf16 %v2743_v33  ;;  %v4034_v33 = vld [vmem:[%s3862_s28 + $0x40] ss:$8 sps:$4 sm:$0xff]  }
 0x10d   : > { %3037 = vrot.lane.b32.xlu1 %v3945_v25, %s3376_s6  ;;  %3032 = vrot.lane.b32.xlu0 %v3949_v26, %s3376_s6 }
 0x10e   : > { %1020 = vst.msk [vmem:[#allocation2 + $0x17] sm:$0xfe] %vm1012_vm0, %v2749_v36  ;;  %1018 = vst.msk [vmem:[#allocation2 + $0xf] sm:$0xfe] %vm1012_vm0, %v2744_v37 }
 0x10f   : > { %1021 = vst.msk [vmem:[#allocation2 + $0x1f] sm:$0x1] %vm1014_vm1, %v2750_v34  ;;  %1019 = vst.msk [vmem:[#allocation2 + $0x17] sm:$0x1] %vm1014_vm1, %v2745_v17  ;;  %v2758_v1 = vpop.permute.xlu1 %2757  ;;  %v2753_v43 = vpop.permute.xlu0 %2752 }
 0x110   : > { %v2760_v29 = vunpack.i.h.bf16 %v2758_v1  ;;  %v2759_v30 = vunpack.i.l.bf16 %v2758_v1  ;;  %v2755_v51 = vunpack.i.h.bf16 %v2753_v43  ;;  %v2754_v46 = vunpack.i.l.bf16 %v2753_v43 }
 0x111   : > { %3047 = vrot.lane.b32.xlu1 %v3962_v38, %s3376_s6  ;;  %3042 = vrot.lane.b32.xlu0 %v3965_v39, %s3376_s6  ;;  %v4045_v1 = vunpack.c.l.bf16 %v4034_v33 }
 0x112   : > { %1024 = vst.msk [vmem:[#allocation2 + $0x27] sm:$0xfe] %vm1012_vm0, %v2759_v30  ;;  %1022 = vst.msk [vmem:[#allocation2 + $0x1f] sm:$0xfe] %vm1012_vm0, %v2754_v46 }
 0x113   : > { %1025 = vst.msk [vmem:[#allocation2 + $0x2f] sm:$0x1] %vm1014_vm1, %v2760_v29  ;;  %1023 = vst.msk [vmem:[#allocation2 + $0x27] sm:$0x1] %vm1014_vm1, %v2755_v51  ;;  %v2768_v48 = vpop.permute.xlu1 %2767  ;;  %v2763_v49 = vpop.permute.xlu0 %2762  ;;  %v3126_v52 = vpack.i.bf16 %v4045_v1, %v3915_v59 }
 0x114   : > { %v2770_v50 = vunpack.i.h.bf16 %v2768_v48  ;;  %v2769_v41 = vunpack.i.l.bf16 %v2768_v48  ;;  %v2765_v42 = vunpack.i.h.bf16 %v2763_v49  ;;  %v2764_v54 = vunpack.i.l.bf16 %v2763_v49 }
 0x115   : > { %3057 = vrot.lane.b32.xlu1 %v3978_v47, %s3376_s6  ;;  %3052 = vrot.lane.b32.xlu0 %v3981_v61, %s3376_s6 }
 0x116   : > { %1028 = vst.msk [vmem:[#allocation2 + $0x37] sm:$0xfe] %vm1012_vm0, %v2769_v41  ;;  %1026 = vst.msk [vmem:[#allocation2 + $0x2f] sm:$0xfe] %vm1012_vm0, %v2764_v54  ;;  %vm1567_vm0 = vcmask 654945  }
 0x117   : > { %1029 = vst.msk [vmem:[#allocation2 + $0x3f] sm:$0x1] %vm1014_vm1, %v2770_v50  ;;  %1027 = vst.msk [vmem:[#allocation2 + $0x37] sm:$0x1] %vm1014_vm1, %v2765_v42  ;;  %v2778_v0 = vpop.permute.xlu1 %2777  ;;  %v2773_v3 = vpop.permute.xlu0 %2772  ;;  %vm1569_vm1 = vcmask 647776  }
 0x118   : > { %v2780_v4 = vunpack.i.h.bf16 %v2778_v0  ;;  %v2779_v13 = vunpack.i.l.bf16 %v2778_v0  ;;  %v2775_v5 = vunpack.i.h.bf16 %v2773_v3  ;;  %v2774_v7 = vunpack.i.l.bf16 %v2773_v3  ;;  %v1447_v0 = vld [vmem:[%s3862_s28 + $0x44] sm:$0x1] }
 0x119   : > { %3067 = vrot.lane.b32.xlu1 %v3992_v6, %s3376_s6  ;;  %3062 = vrot.lane.b32.xlu0 %v3995_v57, %s3376_s6 }
 0x11a   : > { %1082 = vst.msk [vmem:[#allocation2 + $0x6] sm:$0xfc] %vm1078_vm2, %v2779_v13  ;;  %1079 = vst.msk [vmem:[#allocation2 - $0x2] sm:$0xfc] %vm1078_vm2, %v2774_v7 }
 0x11b   : > { %1083 = vst.msk [vmem:[#allocation2 + $0xe] sm:$0x3] %vm1080_vm3, %v2780_v4  ;;  %1081 = vst.msk [vmem:[#allocation2 + $0x6] sm:$0x3] %vm1080_vm3, %v2775_v5  ;;  %v2788_v8 = vpop.permute.xlu1 %2787  ;;  %v2783_v9 = vpop.permute.xlu0 %2782 }
 0x11c   : > { %v2790_v12 = vunpack.i.h.bf16 %v2788_v8  ;;  %v2789_v14 = vunpack.i.l.bf16 %v2788_v8  ;;  %v2785_v15 = vunpack.i.h.bf16 %v2783_v9  ;;  %v2784_v16 = vunpack.i.l.bf16 %v2783_v9 }
 0x11d   : > { %3077 = vrot.lane.b32.xlu1 %v3945_v25, %s3377_s7  ;;  %3072 = vrot.lane.b32.xlu0 %v3949_v26, %s3377_s7  ;;  %v1467_v9 = vunpack.c.l.bf16 %v1447_v0  ;;  %v3311_v0 = vld [vmem:[%s4391_s3] sm:$0xff]  }
 0x11e   : > { %1086 = vst.msk [vmem:[#allocation2 + $0x16] sm:$0xfc] %vm1078_vm2, %v2789_v14  ;;  %1084 = vst.msk [vmem:[#allocation2 + $0xe] sm:$0xfc] %vm1078_vm2, %v2784_v16  ;;  %2323 = vmatprep.subr.bf16.mxu0 %v3311_v0  ;;  %2345 = vmatprep.subr.bf16.mxu1 %v3311_v0 }
 0x11f   : > { %1087 = vst.msk [vmem:[#allocation2 + $0x1e] sm:$0x3] %vm1080_vm3, %v2790_v12  ;;  %1085 = vst.msk [vmem:[#allocation2 + $0x16] sm:$0x3] %vm1080_vm3, %v2785_v15  ;;  %v2798_v18 = vpop.permute.xlu1 %2797  ;;  %v2793_v19 = vpop.permute.xlu0 %2792  ;;  %2324 = vmatpush3.bf16.msra.mxu0 %v3311_v0  ;;  %2352 = vmatpush3.bf16.msra.mxu1 %v3311_v0 }
 0x120   : > { %v2800_v20 = vunpack.i.h.bf16 %v2798_v18  ;;  %v2799_v21 = vunpack.i.l.bf16 %v2798_v18  ;;  %v2795_v22 = vunpack.i.h.bf16 %v2793_v19  ;;  %v2794_v23 = vunpack.i.l.bf16 %v2793_v19 }
 0x121   : > { %3087 = vrot.lane.b32.xlu1 %v3962_v38, %s3377_s7  ;;  %3082 = vrot.lane.b32.xlu0 %v3965_v39, %s3377_s7 }
 0x122   : > { %1090 = vst.msk [vmem:[#allocation2 + $0x26] sm:$0xfc] %vm1078_vm2, %v2799_v21  ;;  %1088 = vst.msk [vmem:[#allocation2 + $0x1e] sm:$0xfc] %vm1078_vm2, %v2794_v23 }
 0x123   : > { %1091 = vst.msk [vmem:[#allocation2 + $0x2e] sm:$0x3] %vm1080_vm3, %v2800_v20  ;;  %1089 = vst.msk [vmem:[#allocation2 + $0x26] sm:$0x3] %vm1080_vm3, %v2795_v22  ;;  %v2808_v26 = vpop.permute.xlu1 %2807  ;;  %v2803_v27 = vpop.permute.xlu0 %2802  ;;  %v4085_v20 = vpack.i.bf16 %v1467_v9, %v4045_v1 }
 0x124   : > { %v2810_v28 = vunpack.i.h.bf16 %v2808_v26  ;;  %v2809_v31 = vunpack.i.l.bf16 %v2808_v26  ;;  %v2805_v32 = vunpack.i.h.bf16 %v2803_v27  ;;  %v2804_v24 = vunpack.i.l.bf16 %v2803_v27 }
 0x125   : > { %3097 = vrot.lane.b32.xlu1 %v3978_v47, %s3377_s7  ;;  %3092 = vrot.lane.b32.xlu0 %v3981_v61, %s3377_s7 }
 0x126   : > { %1094 = vst.msk [vmem:[#allocation2 + $0x36] sm:$0xfc] %vm1078_vm2, %v2809_v31  ;;  %1092 = vst.msk [vmem:[#allocation2 + $0x2e] sm:$0xfc] %vm1078_vm2, %v2804_v24  ;;  %vm1633_vm2 = vcmask 687746  }
 0x127   : > { %1095 = vst.msk [vmem:[#allocation2 + $0x3e] sm:$0x3] %vm1080_vm3, %v2810_v28  ;;  %1093 = vst.msk [vmem:[#allocation2 + $0x36] sm:$0x3] %vm1080_vm3, %v2805_v32  ;;  %v2818_v34 = vpop.permute.xlu1 %2817  ;;  %v2813_v36 = vpop.permute.xlu0 %2812  ;;  %vm1635_vm3 = vcmask 681600  }
 0x128   : > { %v2820_v17 = vunpack.i.h.bf16 %v2818_v34  ;;  %v2819_v37 = vunpack.i.l.bf16 %v2818_v34  ;;  %v2815_v40 = vunpack.i.h.bf16 %v2813_v36  ;;  %v2814_v56 = vunpack.i.l.bf16 %v2813_v36 }
 0x129   : > { %3107 = vrot.lane.b32.xlu1 %v3992_v6, %s3377_s7  ;;  %3102 = vrot.lane.b32.xlu0 %v3995_v57, %s3377_s7  ;;  %s3383_s7 = smov 104  }
 0x12a   : > { %1123 = vst.msk [vmem:[#allocation2 + $0x8] sm:$0xff] %vm1121_vm4, %v2815_v40  ;;  %1122 = vst.msk [vmem:[#allocation2] sm:$0xff] %vm1121_vm4, %v2814_v56 }
 0x12b   : > { %1124 = vst.msk [vmem:[#allocation2 + $0x10] sm:$0xff] %vm1121_vm4, %v2819_v37  ;;  %1125 = vst.msk [vmem:[#allocation2 + $0x18] sm:$0xff] %vm1121_vm4, %v2820_v17  ;;  %v2828_v43 = vpop.permute.xlu1 %2827  ;;  %v2823_v29 = vpop.permute.xlu0 %2822 }
 0x12c   : > { %v2830_v30 = vunpack.i.h.bf16 %v2828_v43  ;;  %v2829_v51 = vunpack.i.l.bf16 %v2828_v43  ;;  %v2825_v46 = vunpack.i.h.bf16 %v2823_v29  ;;  %v2824_v45 = vunpack.i.l.bf16 %v2823_v29 }
 0x12d   : > { %3117 = vrot.lane.b32.xlu1 %v3116_v55, %s3378_s8  ;;  %3112 = vrot.lane.b32.xlu0 %v3111_v58, %s3378_s8 }
 0x12e   : > { %1126 = vst.msk [vmem:[#allocation2 + $0x20] sm:$0xff] %vm1121_vm4, %v2824_v45  ;;  %1127 = vst.msk [vmem:[#allocation2 + $0x28] sm:$0xff] %vm1121_vm4, %v2825_v46 }
 0x12f   : > { %1128 = vst.msk [vmem:[#allocation2 + $0x30] sm:$0xff] %vm1121_vm4, %v2829_v51  ;;  %1129 = vst.msk [vmem:[#allocation2 + $0x38] sm:$0xff] %vm1121_vm4, %v2830_v30  ;;  %v2838_v35 = vpop.permute.xlu1 %2837  ;;  %v2833_v62 = vpop.permute.xlu0 %2832  ;;  %vm1676_vm4 = vcmask 720544  }
 0x130   : > { %v2840_v2 = vunpack.i.h.bf16 %v2838_v35  ;;  %v2839_v48 = vunpack.i.l.bf16 %v2838_v35  ;;  %v2835_v49 = vunpack.i.h.bf16 %v2833_v62  ;;  %v2834_v50 = vunpack.i.l.bf16 %v2833_v62 }
 0x131   : > { %3127 = vrot.lane.b32.xlu1 %v3126_v52, %s3378_s8  ;;  %3122 = vrot.lane.b32.xlu0 %v3121_v63, %s3378_s8 }
 0x132   : > { %1183 = vst.msk [vmem:[#allocation2 + $0x7] sm:$0xfe] %vm1179_vm5, %v2839_v48  ;;  %1180 = vst.msk [vmem:[#allocation2 - $0x1] sm:$0xfe] %vm1179_vm5, %v2834_v50 }
 0x133   : > { %1184 = vst.msk [vmem:[#allocation2 + $0xf] sm:$0x1] %vm1181_vm6, %v2840_v2  ;;  %1182 = vst.msk [vmem:[#allocation2 + $0x7] sm:$0x1] %vm1181_vm6, %v2835_v49  ;;  %v2848_v44 = vpop.permute.xlu1 %2847  ;;  %v2843_v59 = vpop.permute.xlu0 %2842  ;;  %v1468_v49 = vunpack.c.h.bf16 %v4034_v33 }
 0x134   : > { %v2850_v60 = vunpack.i.h.bf16 %v2848_v44  ;;  %v2849_v41 = vunpack.i.l.bf16 %v2848_v44  ;;  %v2845_v42 = vunpack.i.h.bf16 %v2843_v59  ;;  %v2844_v54 = vunpack.i.l.bf16 %v2843_v59 }
 0x135   : > { %3137 = vrot.lane.b32.xlu1 %v3981_v61, %s3379_s9  ;;  %3132 = vrot.lane.b32.xlu0 %v3945_v25, %s3379_s9 }
 0x136   : > { %1187 = vst.msk [vmem:[#allocation2 + $0x17] sm:$0xfe] %vm1179_vm5, %v2849_v41  ;;  %1185 = vst.msk [vmem:[#allocation2 + $0xf] sm:$0xfe] %vm1179_vm5, %v2844_v54  ;;  %v3226_v54 = vpack.i.bf16 %v1468_v49, %v4045_v1 }
 0x137   : > { %1188 = vst.msk [vmem:[#allocation2 + $0x1f] sm:$0x1] %vm1181_vm6, %v2850_v60  ;;  %1186 = vst.msk [vmem:[#allocation2 + $0x17] sm:$0x1] %vm1181_vm6, %v2845_v42  ;;  %v2858_v3 = vpop.permute.xlu1 %2857  ;;  %v2853_v4 = vpop.permute.xlu0 %2852 }
 0x138   : > { %v2860_v13 = vunpack.i.h.bf16 %v2858_v3  ;;  %v2859_v5 = vunpack.i.l.bf16 %v2858_v3  ;;  %v2855_v7 = vunpack.i.h.bf16 %v2853_v4  ;;  %v2854_v8 = vunpack.i.l.bf16 %v2853_v4 }
 0x139   : > { %3147 = vrot.lane.b32.xlu1 %v3995_v57, %s3379_s9  ;;  %3142 = vrot.lane.b32.xlu0 %v3962_v38, %s3379_s9 }
 0x13a   : > { %1191 = vst.msk [vmem:[#allocation2 + $0x27] sm:$0xfe] %vm1179_vm5, %v2859_v5  ;;  %1189 = vst.msk [vmem:[#allocation2 + $0x1f] sm:$0xfe] %vm1179_vm5, %v2854_v8  ;;  %v3312_v5 = vld [vmem:[%s4391_s3 + $0x8] sm:$0xff]  }
 0x13b   : > { %1192 = vst.msk [vmem:[#allocation2 + $0x2f] sm:$0x1] %vm1181_vm6, %v2860_v13  ;;  %1190 = vst.msk [vmem:[#allocation2 + $0x27] sm:$0x1] %vm1181_vm6, %v2855_v7  ;;  %v2868_v12 = vpop.permute.xlu1 %2867  ;;  %v2863_v14 = vpop.permute.xlu0 %2862  ;;  %2325 = vmatprep.subr.bf16.mxu0 %v3312_v5  ;;  %2346 = vmatprep.subr.bf16.mxu1 %v3312_v5 }
 0x13c   : > { %v2870_v15 = vunpack.i.h.bf16 %v2868_v12  ;;  %v2869_v16 = vunpack.i.l.bf16 %v2868_v12  ;;  %v2865_v18 = vunpack.i.h.bf16 %v2863_v14  ;;  %v2864_v19 = vunpack.i.l.bf16 %v2863_v14  ;;  %2326 = vmatpush3.bf16.msra.mxu0 %v3312_v5  ;;  %2353 = vmatpush3.bf16.msra.mxu1 %v3312_v5 }
 0x13d   : > { %3157 = vrot.lane.b32.xlu1 %v3965_v39, %s3379_s9  ;;  %3152 = vrot.lane.b32.xlu0 %v3978_v47, %s3379_s9 }
 0x13e   : > { %1195 = vst.msk [vmem:[#allocation2 + $0x37] sm:$0xfe] %vm1179_vm5, %v2869_v16  ;;  %1193 = vst.msk [vmem:[#allocation2 + $0x2f] sm:$0xfe] %vm1179_vm5, %v2864_v19  ;;  %v3313_v16 = vld [vmem:[%s4391_s3 + $0x10] sm:$0xff]   ;;  %vm1734_vm5 = vcmask 753345  }
 0x13f   : > { %1196 = vst.msk [vmem:[#allocation2 + $0x3f] sm:$0x1] %vm1181_vm6, %v2870_v15  ;;  %1194 = vst.msk [vmem:[#allocation2 + $0x37] sm:$0x1] %vm1181_vm6, %v2865_v18  ;;  %v2878_v21 = vpop.permute.xlu1 %2877  ;;  %v2873_v22 = vpop.permute.xlu0 %2872  ;;  %v1449_v15 = vld [vmem:[%s3862_s28 + $0x4c] sm:$0x1]  ;;  %2327 = vmatprep.subr.bf16.mxu0 %v3313_v16  ;;  %2347 = vmatprep.subr.bf16.mxu1 %v3313_v16 }
 0x140   : > { %v2880_v23 = vunpack.i.h.bf16 %v2878_v21  ;;  %v2879_v26 = vunpack.i.l.bf16 %v2878_v21  ;;  %v2875_v27 = vunpack.i.h.bf16 %v2873_v22  ;;  %v2874_v28 = vunpack.i.l.bf16 %v2873_v22  ;;  %2328 = vmatpush3.bf16.msra.mxu0 %v3313_v16  ;;  %2354 = vmatpush3.bf16.msra.mxu1 %v3313_v16 }
 0x141   : > { %3167 = vrot.lane.b32.xlu1 %v4085_v20, %s3379_s9  ;;  %3162 = vrot.lane.b32.xlu0 %v3992_v6, %s3379_s9  ;;  %vm1736_vm6 = vcmask 746176  }
 0x142   : > { %1249 = vst.msk [vmem:[#allocation2 + $0x6] sm:$0xfc] %vm1245_vm7, %v2879_v26  ;;  %1246 = vst.msk [vmem:[#allocation2 - $0x2] sm:$0xfc] %vm1245_vm7, %v2874_v28  ;;  %v3314_v28 = vld [vmem:[%s4391_s3 + $0x18] sm:$0xff]  }
 0x143   : > { %1250 = vst.msk [vmem:[#allocation2 + $0xe] sm:$0x3] %vm1247_vm8, %v2880_v23  ;;  %1248 = vst.msk [vmem:[#allocation2 + $0x6] sm:$0x3] %vm1247_vm8, %v2875_v27  ;;  %v2888_v31 = vpop.permute.xlu1 %2887  ;;  %v2883_v32 = vpop.permute.xlu0 %2882  ;;  %v1469_v27 = vunpack.c.l.bf16 %v1449_v15  ;;  %2329 = vmatprep.subr.bf16.mxu0 %v3314_v28  ;;  %2348 = vmatprep.subr.bf16.mxu1 %v3314_v28 }
 0x144   : > { %v2890_v24 = vunpack.i.h.bf16 %v2888_v31  ;;  %v2889_v34 = vunpack.i.l.bf16 %v2888_v31  ;;  %v2885_v36 = vunpack.i.h.bf16 %v2883_v32  ;;  %v2884_v17 = vunpack.i.l.bf16 %v2883_v32  ;;  %2330 = vmatpush3.bf16.msra.mxu0 %v3314_v28  ;;  %2355 = vmatpush3.bf16.msra.mxu1 %v3314_v28 }
 0x145   : > { %3177 = vrot.lane.b32.xlu1 %v3981_v61, %s3380_s10  ;;  %3172 = vrot.lane.b32.xlu0 %v3945_v25, %s3380_s10 }
 0x146   : > { %1253 = vst.msk [vmem:[#allocation2 + $0x16] sm:$0xfc] %vm1245_vm7, %v2889_v34  ;;  %1251 = vst.msk [vmem:[#allocation2 + $0xe] sm:$0xfc] %vm1245_vm7, %v2884_v17 }
 0x147   : > { %1254 = vst.msk [vmem:[#allocation2 + $0x1e] sm:$0x3] %vm1247_vm8, %v2890_v24  ;;  %1252 = vst.msk [vmem:[#allocation2 + $0x16] sm:$0x3] %vm1247_vm8, %v2885_v36  ;;  %v2898_v37 = vpop.permute.xlu1 %2897  ;;  %v2893_v40 = vpop.permute.xlu0 %2892 }
 0x148   : > { %v2900_v56 = vunpack.i.h.bf16 %v2898_v37  ;;  %v2899_v55 = vunpack.i.l.bf16 %v2898_v37  ;;  %v2895_v58 = vunpack.i.h.bf16 %v2893_v40  ;;  %v2894_v43 = vunpack.i.l.bf16 %v2893_v40  ;;  %v3315_v40 = vld [vmem:[%s4391_s3 + $0x20] sm:$0xff]  }
 0x149   : > { %3187 = vrot.lane.b32.xlu1 %v3995_v57, %s3380_s10  ;;  %3182 = vrot.lane.b32.xlu0 %v3962_v38, %s3380_s10  ;;  %v4181_v37 = vpack.i.bf16 %v1469_v27, %v1468_v49 }
 0x14a   : > { %1257 = vst.msk [vmem:[#allocation2 + $0x26] sm:$0xfc] %vm1245_vm7, %v2899_v55  ;;  %1255 = vst.msk [vmem:[#allocation2 + $0x1e] sm:$0xfc] %vm1245_vm7, %v2894_v43  ;;  %2331 = vmatprep.subr.bf16.mxu0 %v3315_v40  ;;  %2349 = vmatprep.subr.bf16.mxu1 %v3315_v40 }
 0x14b   : > { %1258 = vst.msk [vmem:[#allocation2 + $0x2e] sm:$0x3] %vm1247_vm8, %v2900_v56  ;;  %1256 = vst.msk [vmem:[#allocation2 + $0x26] sm:$0x3] %vm1247_vm8, %v2895_v58  ;;  %v2908_v25 = vpop.permute.xlu1 %2907  ;;  %v2903_v29 = vpop.permute.xlu0 %2902  ;;  %2332 = vmatpush3.bf16.msra.mxu0 %v3315_v40  ;;  %2356 = vmatpush3.bf16.msra.mxu1 %v3315_v40 }
 0x14c   : > { %v2910_v30 = vunpack.i.h.bf16 %v2908_v25  ;;  %v2909_v51 = vunpack.i.l.bf16 %v2908_v25  ;;  %v2905_v46 = vunpack.i.h.bf16 %v2903_v29  ;;  %v2904_v45 = vunpack.i.l.bf16 %v2903_v29  ;;  %v3316_v29 = vld [vmem:[%s4391_s3 + $0x28] sm:$0xff]  }
 0x14d   : > { %3197 = vrot.lane.b32.xlu1 %v3965_v39, %s3380_s10  ;;  %3192 = vrot.lane.b32.xlu0 %v3978_v47, %s3380_s10 }
 0x14e   : > { %1261 = vst.msk [vmem:[#allocation2 + $0x36] sm:$0xfc] %vm1245_vm7, %v2909_v51  ;;  %1259 = vst.msk [vmem:[#allocation2 + $0x2e] sm:$0xfc] %vm1245_vm7, %v2904_v45  ;;  %2333 = vmatprep.subr.bf16.mxu0 %v3316_v29  ;;  %2350 = vmatprep.subr.bf16.mxu1 %v3316_v29  ;;  %vm1800_vm7 = vcmask 786146  }
 0x14f   : > { %1262 = vst.msk [vmem:[#allocation2 + $0x3e] sm:$0x3] %vm1247_vm8, %v2910_v30  ;;  %1260 = vst.msk [vmem:[#allocation2 + $0x36] sm:$0x3] %vm1247_vm8, %v2905_v46  ;;  %v2918_v52 = vpop.permute.xlu1 %2917  ;;  %v2913_v63 = vpop.permute.xlu0 %2912  ;;  %2334 = vmatpush3.bf16.msra.mxu0 %v3316_v29  ;;  %2357 = vmatpush3.bf16.msra.mxu1 %v3316_v29  ;;  %vm1802_vm8 = vcmask 780000  }
 0x150   : > { %v2920_v35 = vunpack.i.h.bf16 %v2918_v52  ;;  %v2919_v62 = vunpack.i.l.bf16 %v2918_v52  ;;  %v2915_v2 = vunpack.i.h.bf16 %v2913_v63  ;;  %v2914_v48 = vunpack.i.l.bf16 %v2913_v63 }
 0x151   : > { %3207 = vrot.lane.b32.xlu1 %v4085_v20, %s3380_s10  ;;  %3202 = vrot.lane.b32.xlu0 %v3992_v6, %s3380_s10  ;;  %s2295_s10 = sshll.u32 %s4412_s18, 3 }
 0x152   : > { %1290 = vst.msk [vmem:[#allocation2 + $0x8] sm:$0xff] %vm1288_vm9, %v2915_v2  ;;  %1289 = vst.msk [vmem:[#allocation2] sm:$0xff] %vm1288_vm9, %v2914_v48 }
 0x153   : > { %1291 = vst.msk [vmem:[#allocation2 + $0x10] sm:$0xff] %vm1288_vm9, %v2919_v62  ;;  %1292 = vst.msk [vmem:[#allocation2 + $0x18] sm:$0xff] %vm1288_vm9, %v2920_v35  ;;  %v2928_v50 = vpop.permute.xlu1 %2927  ;;  %v2923_v44 = vpop.permute.xlu0 %2922  ;;  %v3317_v35 = vld [vmem:[%s4391_s3 + $0x30] sm:$0x3f]  }
 0x154   : > { %v2930_v59 = vunpack.i.h.bf16 %v2928_v50  ;;  %v2929_v60 = vunpack.i.l.bf16 %v2928_v50  ;;  %v2925_v41 = vunpack.i.h.bf16 %v2923_v44  ;;  %v2924_v42 = vunpack.i.l.bf16 %v2923_v44  ;;  %2359 = vmatprep.subr.msk.bf16.mxu0 %vm2072_vm14, %v3317_v35  ;;  %2360 = vmatprep.subr.msk.bf16.mxu1 %vm2072_vm14, %v3317_v35 }
 0x155   : > { %3217 = vrot.lane.b32.xlu1 %v3930_v10, %s3381_s11  ;;  %3212 = vrot.lane.b32.xlu0 %v3934_v11, %s3381_s11  ;;  %v2074_v50 = vsel %vm2072_vm14, %v3317_v35, 0  ;;  %vm2059_vm14 = vcmask 883712  }
 0x156   : > { %1293 = vst.msk [vmem:[#allocation2 + $0x20] sm:$0xff] %vm1288_vm9, %v2924_v42  ;;  %1294 = vst.msk [vmem:[#allocation2 + $0x28] sm:$0xff] %vm1288_vm9, %v2925_v41  ;;  %2336 = vmatpush3.bf16.msra.mxu0 %v2074_v50  ;;  %2358 = vmatpush3.bf16.msra.mxu1 %v2074_v50 }
 0x157   : > { %1295 = vst.msk [vmem:[#allocation2 + $0x30] sm:$0xff] %vm1288_vm9, %v2929_v60  ;;  %1296 = vst.msk [vmem:[#allocation2 + $0x38] sm:$0xff] %vm1288_vm9, %v2930_v59  ;;  %v2938_v10 = vpop.permute.xlu1 %2937  ;;  %v2933_v11 = vpop.permute.xlu0 %2932  ;;  %vm1843_vm9 = vcmask 818944  }
 0x158   : > { %v2940_v3 = vunpack.i.h.bf16 %v2938_v10  ;;  %v2939_v4 = vunpack.i.l.bf16 %v2938_v10  ;;  %v2935_v13 = vunpack.i.h.bf16 %v2933_v11  ;;  %v2934_v1 = vunpack.i.l.bf16 %v2933_v11 }
 0x159   : > { %3227 = vrot.lane.b32.xlu1 %v3226_v54, %s3381_s11  ;;  %3222 = vrot.lane.b32.xlu0 %v3904_v53, %s3381_s11  ;;  %s2296_s11 = sshll.u32 %s4406_s19, 5 }
 0x15a   : > { %1350 = vst.msk [vmem:[#allocation2 + $0x7] sm:$0xfe] %vm1346_vm10, %v2939_v4  ;;  %1347 = vst.msk [vmem:[#allocation2 - $0x1] sm:$0xfe] %vm1346_vm10, %v2934_v1  ;;  %s340_s12 = sadd.s32 %s2296_s11, %s2295_s10 }
 0x15b   : > { %1351 = vst.msk [vmem:[#allocation2 + $0xf] sm:$0x1] %vm1348_vm11, %v2940_v3  ;;  %1349 = vst.msk [vmem:[#allocation2 + $0x7] sm:$0x1] %vm1348_vm11, %v2935_v13  ;;  %v2948_v7 = vpop.permute.xlu1 %2947  ;;  %v2943_v8 = vpop.permute.xlu0 %2942  ;;  %s2297_s13 = sshll.u32 %s340_s12, 3 }
 0x15c   : > { %v2950_v9 = vunpack.i.h.bf16 %v2948_v7  ;;  %v2949_v12 = vunpack.i.l.bf16 %v2948_v7  ;;  %v2945_v53 = vunpack.i.h.bf16 %v2943_v8  ;;  %v2944_v14 = vunpack.i.l.bf16 %v2943_v8  ;;  %s342_s25 = scalar_lea.vmem %s4393_s5, %s2297_s13 }
 0x15d   : > { %3237 = vrot.lane.b32.xlu1 %v3978_v47, %s3382_s16  ;;  %3232 = vrot.lane.b32.xlu0 %v3981_v61, %s3382_s16 }
 0x15e   : > { %1358 = vst.msk [vmem:[#allocation2 + $0x27] sm:$0xfe] %vm1346_vm10, %v2949_v12  ;;  %1356 = vst.msk [vmem:[#allocation2 + $0x1f] sm:$0xfe] %vm1346_vm10, %v2944_v14 }
 0x15f   : > { %1359 = vst.msk [vmem:[#allocation2 + $0x2f] sm:$0x1] %vm1348_vm11, %v2950_v9  ;;  %1357 = vst.msk [vmem:[#allocation2 + $0x27] sm:$0x1] %vm1348_vm11, %v2945_v53  ;;  %v2958_v18 = vpop.permute.xlu1 %2957  ;;  %v2953_v19 = vpop.permute.xlu0 %2952 }
 0x160   : > { %v2960_v21 = vunpack.i.h.bf16 %v2958_v18  ;;  %v2959_v22 = vunpack.i.l.bf16 %v2958_v18  ;;  %v2955_v23 = vunpack.i.h.bf16 %v2953_v19  ;;  %v2954_v26 = vunpack.i.l.bf16 %v2953_v19 }
 0x161   : > { %3247 = vrot.lane.b32.xlu1 %v3992_v6, %s3382_s16  ;;  %3242 = vrot.lane.b32.xlu0 %v3995_v57, %s3382_s16 }
 0x162   : > { %1354 = vst.msk [vmem:[#allocation2 + $0x17] sm:$0xfe] %vm1346_vm10, %v2959_v22  ;;  %1352 = vst.msk [vmem:[#allocation2 + $0xf] sm:$0xfe] %vm1346_vm10, %v2954_v26 }
 0x163   : > { %1355 = vst.msk [vmem:[#allocation2 + $0x1f] sm:$0x1] %vm1348_vm11, %v2960_v21  ;;  %1353 = vst.msk [vmem:[#allocation2 + $0x17] sm:$0x1] %vm1348_vm11, %v2955_v23  ;;  %v2968_v31 = vpop.permute.xlu1 %2967  ;;  %v2963_v32 = vpop.permute.xlu0 %2962 }
 0x164   : > { %v2970_v24 = vunpack.i.h.bf16 %v2968_v31  ;;  %v2969_v34 = vunpack.i.l.bf16 %v2968_v31  ;;  %v2965_v36 = vunpack.i.h.bf16 %v2963_v32  ;;  %v2964_v17 = vunpack.i.l.bf16 %v2963_v32 }
 0x165   : > { %3257 = vrot.lane.b32.xlu1 %v3962_v38, %s3382_s16  ;;  %3252 = vrot.lane.b32.xlu0 %v3965_v39, %s3382_s16 }
 0x166   : > { %1362 = vst.msk [vmem:[#allocation2 + $0x37] sm:$0xfe] %vm1346_vm10, %v2969_v34  ;;  %1360 = vst.msk [vmem:[#allocation2 + $0x2f] sm:$0xfe] %vm1346_vm10, %v2964_v17  ;;  %vm1901_vm10 = vcmask 851745  }
 0x167   : > { %1363 = vst.msk [vmem:[#allocation2 + $0x3f] sm:$0x1] %vm1348_vm11, %v2970_v24  ;;  %1361 = vst.msk [vmem:[#allocation2 + $0x37] sm:$0x1] %vm1348_vm11, %v2965_v36  ;;  %v2978_v56 = vpop.permute.xlu1 %2977  ;;  %v2973_v33 = vpop.permute.xlu0 %2972  ;;  %vm1903_vm11 = vcmask 844576  }
 0x168   : > { %v2980_v55 = vunpack.i.h.bf16 %v2978_v56  ;;  %v2979_v58 = vunpack.i.l.bf16 %v2978_v56  ;;  %v2975_v43 = vunpack.i.h.bf16 %v2973_v33  ;;  %v2974_v25 = vunpack.i.l.bf16 %v2973_v33 }
 0x169   : > { %3267 = vrot.lane.b32.xlu1 %v4181_v37, %s3382_s16  ;;  %3262 = vrot.lane.b32.xlu0 %v4085_v20, %s3382_s16 }
 0x16a   : > { %1416 = vst.msk [vmem:[#allocation2 + $0x6] sm:$0xfc] %vm1412_vm12, %v2979_v58  ;;  %1413 = vst.msk [vmem:[#allocation2 - $0x2] sm:$0xfc] %vm1412_vm12, %v2974_v25 }
 0x16b   : > { %1417 = vst.msk [vmem:[#allocation2 + $0xe] sm:$0x3] %vm1414_vm13, %v2980_v55  ;;  %1415 = vst.msk [vmem:[#allocation2 + $0x6] sm:$0x3] %vm1414_vm13, %v2975_v43  ;;  %v2988_v30 = vpop.permute.xlu1 %2987  ;;  %v2983_v51 = vpop.permute.xlu0 %2982 }
 0x16c   : > { %v2990_v46 = vunpack.i.h.bf16 %v2988_v30  ;;  %v2989_v45 = vunpack.i.l.bf16 %v2988_v30  ;;  %v2985_v52 = vunpack.i.h.bf16 %v2983_v51  ;;  %v2984_v63 = vunpack.i.l.bf16 %v2983_v51 }
 0x16d   : > { %3277 = vrot.lane.b32.xlu1 %v3978_v47, %s3383_s7  ;;  %3272 = vrot.lane.b32.xlu0 %v3981_v61, %s3383_s7 }
 0x16e   : > { %1424 = vst.msk [vmem:[#allocation2 + $0x26] sm:$0xfc] %vm1412_vm12, %v2989_v45  ;;  %1422 = vst.msk [vmem:[#allocation2 + $0x1e] sm:$0xfc] %vm1412_vm12, %v2984_v63 }
 0x16f   : > { %1425 = vst.msk [vmem:[#allocation2 + $0x2e] sm:$0x3] %vm1414_vm13, %v2990_v46  ;;  %1423 = vst.msk [vmem:[#allocation2 + $0x26] sm:$0x3] %vm1414_vm13, %v2985_v52  ;;  %v2998_v62 = vpop.permute.xlu1 %2997  ;;  %v2993_v47 = vpop.permute.xlu0 %2992 }
 0x170   : > { %v3000_v2 = vunpack.i.h.bf16 %v2998_v62  ;;  %v2999_v48 = vunpack.i.l.bf16 %v2998_v62  ;;  %v2995_v61 = vunpack.i.h.bf16 %v2993_v47  ;;  %v2994_v49 = vunpack.i.l.bf16 %v2993_v47 }
 0x171   : > { %3287 = vrot.lane.b32.xlu1 %v3992_v6, %s3383_s7  ;;  %3282 = vrot.lane.b32.xlu0 %v3995_v57, %s3383_s7 }
 0x172   : > { %1420 = vst.msk [vmem:[#allocation2 + $0x16] sm:$0xfc] %vm1412_vm12, %v2999_v48  ;;  %1418 = vst.msk [vmem:[#allocation2 + $0xe] sm:$0xfc] %vm1412_vm12, %v2994_v49 }
 0x173   : > { %1421 = vst.msk [vmem:[#allocation2 + $0x1e] sm:$0x3] %vm1414_vm13, %v3000_v2  ;;  %1419 = vst.msk [vmem:[#allocation2 + $0x16] sm:$0x3] %vm1414_vm13, %v2995_v61  ;;  %v3008_v44 = vpop.permute.xlu1 %3007  ;;  %v3003_v59 = vpop.permute.xlu0 %3002 }
 0x174   : > { %v3010_v60 = vunpack.i.h.bf16 %v3008_v44  ;;  %v3009_v41 = vunpack.i.l.bf16 %v3008_v44  ;;  %v3005_v42 = vunpack.i.h.bf16 %v3003_v59  ;;  %v3004_v6 = vunpack.i.l.bf16 %v3003_v59 }
 0x175   : > { %3297 = vrot.lane.b32.xlu1 %v3962_v38, %s3383_s7  ;;  %3292 = vrot.lane.b32.xlu0 %v3965_v39, %s3383_s7 }
 0x176   : > { %1428 = vst.msk [vmem:[#allocation2 + $0x36] sm:$0xfc] %vm1412_vm12, %v3009_v41  ;;  %1426 = vst.msk [vmem:[#allocation2 + $0x2e] sm:$0xfc] %vm1412_vm12, %v3004_v6  ;;  %vm1967_vm12 = vcmask 884546  }
 0x177   : > { %1429 = vst.msk [vmem:[#allocation2 + $0x3e] sm:$0x3] %vm1414_vm13, %v3010_v60  ;;  %1427 = vst.msk [vmem:[#allocation2 + $0x36] sm:$0x3] %vm1414_vm13, %v3005_v42  ;;  %v3018_v57 = vpop.permute.xlu1 %3017  ;;  %v3013_v54 = vpop.permute.xlu0 %3012  ;;  %vm1969_vm13 = vcmask 878400  }
 0x178   : > { %v3020_v0 = vunpack.i.h.bf16 %v3018_v57  ;;  %v3019_v10 = vunpack.i.l.bf16 %v3018_v57  ;;  %v3015_v11 = vunpack.i.h.bf16 %v3013_v54  ;;  %v3014_v3 = vunpack.i.l.bf16 %v3013_v54 }
 0x179   : > { %3307 = vrot.lane.b32.xlu1 %v4181_v37, %s3383_s7  ;;  %3302 = vrot.lane.b32.xlu0 %v4085_v20, %s3383_s7 }
 0x17a   : > { %1504 = vst.msk [vmem:[#allocation2 + $0x8] sm:$0xff] %vm1502_vm15, %v3015_v11  ;;  %1503 = vst.msk [vmem:[#allocation2] sm:$0xff] %vm1502_vm15, %v3014_v3 }
 0x17b   : > { %1507 = vst.msk [vmem:[#allocation2 + $0x20] sm:$0xff] %vm1502_vm15, %v3019_v10  ;;  %1508 = vst.msk [vmem:[#allocation2 + $0x28] sm:$0xff] %vm1502_vm15, %v3020_v0  ;;  %v3028_v38 = vpop.permute.xlu1 %3027  ;;  %v3023_v39 = vpop.permute.xlu0 %3022 }
 0x17c   : > { %v3030_v4 = vunpack.i.h.bf16 %v3028_v38  ;;  %v3029_v13 = vunpack.i.l.bf16 %v3028_v38  ;;  %v3025_v1 = vunpack.i.h.bf16 %v3023_v39  ;;  %v3024_v5 = vunpack.i.l.bf16 %v3023_v39 }
 0x17e   : > { %1505 = vst.msk [vmem:[#allocation2 + $0x10] sm:$0xff] %vm1502_vm15, %v3024_v5  ;;  %1506 = vst.msk [vmem:[#allocation2 + $0x18] sm:$0xff] %vm1502_vm15, %v3025_v1 }
 0x17f   : > { %1509 = vst.msk [vmem:[#allocation2 + $0x30] sm:$0xff] %vm1502_vm15, %v3029_v13  ;;  %1510 = vst.msk [vmem:[#allocation2 + $0x38] sm:$0xff] %vm1502_vm15, %v3030_v4  ;;  %v3038_v20 = vpop.permute.xlu1 %3037  ;;  %v3033_v7 = vpop.permute.xlu0 %3032  ;;  %vm2141_vm15 = vcmask 261120  }
 0x180   : > { %v3040_v8 = vunpack.i.h.bf16 %v3038_v20  ;;  %v3039_v9 = vunpack.i.l.bf16 %v3038_v20  ;;  %v3035_v12 = vunpack.i.h.bf16 %v3033_v7  ;;  %v3034_v53 = vunpack.i.l.bf16 %v3033_v7 }
 0x182   : > { %1571 = vst.msk [vmem:[#allocation2 + $0x7] sm:$0xfe] %vm1567_vm0, %v3039_v9  ;;  %1568 = vst.msk [vmem:[#allocation2 - $0x1] sm:$0xfe] %vm1567_vm0, %v3034_v53 }
 0x183   : > { %1572 = vst.msk [vmem:[#allocation2 + $0xf] sm:$0x1] %vm1569_vm1, %v3040_v8  ;;  %1570 = vst.msk [vmem:[#allocation2 + $0x7] sm:$0x1] %vm1569_vm1, %v3035_v12  ;;  %v3048_v14 = vpop.permute.xlu1 %3047  ;;  %v3043_v15 = vpop.permute.xlu0 %3042 }
 0x184   : > { %v3050_v16 = vunpack.i.h.bf16 %v3048_v14  ;;  %v3049_v18 = vunpack.i.l.bf16 %v3048_v14  ;;  %v3045_v19 = vunpack.i.h.bf16 %v3043_v15  ;;  %v3044_v21 = vunpack.i.l.bf16 %v3043_v15 }
 0x186   : > { %1579 = vst.msk [vmem:[#allocation2 + $0x27] sm:$0xfe] %vm1567_vm0, %v3049_v18  ;;  %1577 = vst.msk [vmem:[#allocation2 + $0x1f] sm:$0xfe] %vm1567_vm0, %v3044_v21 }
 0x187   : > { %1580 = vst.msk [vmem:[#allocation2 + $0x2f] sm:$0x1] %vm1569_vm1, %v3050_v16  ;;  %1578 = vst.msk [vmem:[#allocation2 + $0x27] sm:$0x1] %vm1569_vm1, %v3045_v19  ;;  %v3058_v22 = vpop.permute.xlu1 %3057  ;;  %v3053_v23 = vpop.permute.xlu0 %3052 }
 0x188   : > { %v3060_v26 = vunpack.i.h.bf16 %v3058_v22  ;;  %v3059_v27 = vunpack.i.l.bf16 %v3058_v22  ;;  %v3055_v28 = vunpack.i.h.bf16 %v3053_v23  ;;  %v3054_v31 = vunpack.i.l.bf16 %v3053_v23 }
 0x18a   : > { %1575 = vst.msk [vmem:[#allocation2 + $0x17] sm:$0xfe] %vm1567_vm0, %v3059_v27  ;;  %1573 = vst.msk [vmem:[#allocation2 + $0xf] sm:$0xfe] %vm1567_vm0, %v3054_v31 }
 0x18b   : > { %1576 = vst.msk [vmem:[#allocation2 + $0x1f] sm:$0x1] %vm1569_vm1, %v3060_v26  ;;  %1574 = vst.msk [vmem:[#allocation2 + $0x17] sm:$0x1] %vm1569_vm1, %v3055_v28  ;;  %v3068_v32 = vpop.permute.xlu1 %3067  ;;  %v3063_v24 = vpop.permute.xlu0 %3062 }
 0x18c   : > { %v3070_v34 = vunpack.i.h.bf16 %v3068_v32  ;;  %v3069_v36 = vunpack.i.l.bf16 %v3068_v32  ;;  %v3065_v17 = vunpack.i.h.bf16 %v3063_v24  ;;  %v3064_v37 = vunpack.i.l.bf16 %v3063_v24 }
 0x18e   : > { %1583 = vst.msk [vmem:[#allocation2 + $0x37] sm:$0xfe] %vm1567_vm0, %v3069_v36  ;;  %1581 = vst.msk [vmem:[#allocation2 + $0x2f] sm:$0xfe] %vm1567_vm0, %v3064_v37 }
 0x18f   : > { %1584 = vst.msk [vmem:[#allocation2 + $0x3f] sm:$0x1] %vm1569_vm1, %v3070_v34  ;;  %1582 = vst.msk [vmem:[#allocation2 + $0x37] sm:$0x1] %vm1569_vm1, %v3065_v17  ;;  %v3078_v40 = vpop.permute.xlu1 %3077  ;;  %v3073_v56 = vpop.permute.xlu0 %3072 }
 0x190   : > { %v3080_v33 = vunpack.i.h.bf16 %v3078_v40  ;;  %v3079_v55 = vunpack.i.l.bf16 %v3078_v40  ;;  %v3075_v58 = vunpack.i.h.bf16 %v3073_v56  ;;  %v3074_v43 = vunpack.i.l.bf16 %v3073_v56 }
 0x192   : > { %1637 = vst.msk [vmem:[#allocation2 + $0x6] sm:$0xfc] %vm1633_vm2, %v3079_v55  ;;  %1634 = vst.msk [vmem:[#allocation2 - $0x2] sm:$0xfc] %vm1633_vm2, %v3074_v43 }
 0x193   : > { %1638 = vst.msk [vmem:[#allocation2 + $0xe] sm:$0x3] %vm1635_vm3, %v3080_v33  ;;  %1636 = vst.msk [vmem:[#allocation2 + $0x6] sm:$0x3] %vm1635_vm3, %v3075_v58  ;;  %v3088_v25 = vpop.permute.xlu1 %3087  ;;  %v3083_v29 = vpop.permute.xlu0 %3082 }
 0x194   : > { %v3090_v30 = vunpack.i.h.bf16 %v3088_v25  ;;  %v3089_v51 = vunpack.i.l.bf16 %v3088_v25  ;;  %v3085_v46 = vunpack.i.h.bf16 %v3083_v29  ;;  %v3084_v45 = vunpack.i.l.bf16 %v3083_v29 }
 0x196   : > { %1645 = vst.msk [vmem:[#allocation2 + $0x26] sm:$0xfc] %vm1633_vm2, %v3089_v51  ;;  %1643 = vst.msk [vmem:[#allocation2 + $0x1e] sm:$0xfc] %vm1633_vm2, %v3084_v45 }
 0x197   : > { %1646 = vst.msk [vmem:[#allocation2 + $0x2e] sm:$0x3] %vm1635_vm3, %v3090_v30  ;;  %1644 = vst.msk [vmem:[#allocation2 + $0x26] sm:$0x3] %vm1635_vm3, %v3085_v46  ;;  %v3098_v52 = vpop.permute.xlu1 %3097  ;;  %v3093_v63 = vpop.permute.xlu0 %3092 }
 0x198   : > { %v3100_v35 = vunpack.i.h.bf16 %v3098_v52  ;;  %v3099_v62 = vunpack.i.l.bf16 %v3098_v52  ;;  %v3095_v47 = vunpack.i.h.bf16 %v3093_v63  ;;  %v3094_v2 = vunpack.i.l.bf16 %v3093_v63 }
 0x19a   : > { %1641 = vst.msk [vmem:[#allocation2 + $0x16] sm:$0xfc] %vm1633_vm2, %v3099_v62  ;;  %1639 = vst.msk [vmem:[#allocation2 + $0xe] sm:$0xfc] %vm1633_vm2, %v3094_v2 }
 0x19b   : > { %1642 = vst.msk [vmem:[#allocation2 + $0x1e] sm:$0x3] %vm1635_vm3, %v3100_v35  ;;  %1640 = vst.msk [vmem:[#allocation2 + $0x16] sm:$0x3] %vm1635_vm3, %v3095_v47  ;;  %v3108_v48 = vpop.permute.xlu1 %3107  ;;  %v3103_v61 = vpop.permute.xlu0 %3102 }
 0x19c   : > { %v3110_v49 = vunpack.i.h.bf16 %v3108_v48  ;;  %v3109_v50 = vunpack.i.l.bf16 %v3108_v48  ;;  %v3105_v44 = vunpack.i.h.bf16 %v3103_v61  ;;  %v3104_v59 = vunpack.i.l.bf16 %v3103_v61 }
 0x19e   : > { %1649 = vst.msk [vmem:[#allocation2 + $0x36] sm:$0xfc] %vm1633_vm2, %v3109_v50  ;;  %1647 = vst.msk [vmem:[#allocation2 + $0x2e] sm:$0xfc] %vm1633_vm2, %v3104_v59 }
 0x19f   : > { %1650 = vst.msk [vmem:[#allocation2 + $0x3e] sm:$0x3] %vm1635_vm3, %v3110_v49  ;;  %1648 = vst.msk [vmem:[#allocation2 + $0x36] sm:$0x3] %vm1635_vm3, %v3105_v44  ;;  %v3118_v60 = vpop.permute.xlu1 %3117  ;;  %v3113_v41 = vpop.permute.xlu0 %3112 }
 0x1a0   : > { %v3120_v42 = vunpack.i.h.bf16 %v3118_v60  ;;  %v3119_v6 = vunpack.i.l.bf16 %v3118_v60  ;;  %v3115_v57 = vunpack.i.h.bf16 %v3113_v41  ;;  %v3114_v54 = vunpack.i.l.bf16 %v3113_v41 }
 0x1a2   : > { %1678 = vst.msk [vmem:[#allocation2 + $0x8] sm:$0xff] %vm1676_vm4, %v3115_v57  ;;  %1677 = vst.msk [vmem:[#allocation2] sm:$0xff] %vm1676_vm4, %v3114_v54 }
 0x1a3   : > { %1681 = vst.msk [vmem:[#allocation2 + $0x20] sm:$0xff] %vm1676_vm4, %v3119_v6  ;;  %1682 = vst.msk [vmem:[#allocation2 + $0x28] sm:$0xff] %vm1676_vm4, %v3120_v42  ;;  %v3128_v0 = vpop.permute.xlu1 %3127  ;;  %v3123_v10 = vpop.permute.xlu0 %3122 }
 0x1a4   : > { %v3130_v11 = vunpack.i.h.bf16 %v3128_v0  ;;  %v3129_v3 = vunpack.i.l.bf16 %v3128_v0  ;;  %v3125_v38 = vunpack.i.h.bf16 %v3123_v10  ;;  %v3124_v39 = vunpack.i.l.bf16 %v3123_v10 }
 0x1a6   : > { %1679 = vst.msk [vmem:[#allocation2 + $0x10] sm:$0xff] %vm1676_vm4, %v3124_v39  ;;  %1680 = vst.msk [vmem:[#allocation2 + $0x18] sm:$0xff] %vm1676_vm4, %v3125_v38 }
 0x1a7   : > { %1683 = vst.msk [vmem:[#allocation2 + $0x30] sm:$0xff] %vm1676_vm4, %v3129_v3  ;;  %1684 = vst.msk [vmem:[#allocation2 + $0x38] sm:$0xff] %vm1676_vm4, %v3130_v11  ;;  %v3138_v4 = vpop.permute.xlu1 %3137  ;;  %v3133_v13 = vpop.permute.xlu0 %3132 }
 0x1a8   : > { %v3140_v1 = vunpack.i.h.bf16 %v3138_v4  ;;  %v3139_v5 = vunpack.i.l.bf16 %v3138_v4  ;;  %v3135_v20 = vunpack.i.h.bf16 %v3133_v13  ;;  %v3134_v7 = vunpack.i.l.bf16 %v3133_v13 }
 0x1aa   : > { %1738 = vst.msk [vmem:[#allocation2 + $0x7] sm:$0xfe] %vm1734_vm5, %v3139_v5  ;;  %1735 = vst.msk [vmem:[#allocation2 - $0x1] sm:$0xfe] %vm1734_vm5, %v3134_v7 }
 0x1ab   : > { %1739 = vst.msk [vmem:[#allocation2 + $0xf] sm:$0x1] %vm1736_vm6, %v3140_v1  ;;  %1737 = vst.msk [vmem:[#allocation2 + $0x7] sm:$0x1] %vm1736_vm6, %v3135_v20  ;;  %v3148_v8 = vpop.permute.xlu1 %3147  ;;  %v3143_v9 = vpop.permute.xlu0 %3142 }
 0x1ac   : > { %v3150_v12 = vunpack.i.h.bf16 %v3148_v8  ;;  %v3149_v53 = vunpack.i.l.bf16 %v3148_v8  ;;  %v3145_v14 = vunpack.i.h.bf16 %v3143_v9  ;;  %v3144_v15 = vunpack.i.l.bf16 %v3143_v9 }
 0x1ae   : > { %1746 = vst.msk [vmem:[#allocation2 + $0x27] sm:$0xfe] %vm1734_vm5, %v3149_v53  ;;  %1744 = vst.msk [vmem:[#allocation2 + $0x1f] sm:$0xfe] %vm1734_vm5, %v3144_v15 }
 0x1af   : > { %1747 = vst.msk [vmem:[#allocation2 + $0x2f] sm:$0x1] %vm1736_vm6, %v3150_v12  ;;  %1745 = vst.msk [vmem:[#allocation2 + $0x27] sm:$0x1] %vm1736_vm6, %v3145_v14  ;;  %v3158_v16 = vpop.permute.xlu1 %3157  ;;  %v3153_v18 = vpop.permute.xlu0 %3152 }
 0x1b0   : > { %v3160_v19 = vunpack.i.h.bf16 %v3158_v16  ;;  %v3159_v21 = vunpack.i.l.bf16 %v3158_v16  ;;  %v3155_v22 = vunpack.i.h.bf16 %v3153_v18  ;;  %v3154_v23 = vunpack.i.l.bf16 %v3153_v18 }
 0x1b2   : > { %1742 = vst.msk [vmem:[#allocation2 + $0x17] sm:$0xfe] %vm1734_vm5, %v3159_v21  ;;  %1740 = vst.msk [vmem:[#allocation2 + $0xf] sm:$0xfe] %vm1734_vm5, %v3154_v23 }
 0x1b3   : > { %1743 = vst.msk [vmem:[#allocation2 + $0x1f] sm:$0x1] %vm1736_vm6, %v3160_v19  ;;  %1741 = vst.msk [vmem:[#allocation2 + $0x17] sm:$0x1] %vm1736_vm6, %v3155_v22  ;;  %v3168_v26 = vpop.permute.xlu1 %3167  ;;  %v3163_v27 = vpop.permute.xlu0 %3162 }
 0x1b4   : > { %v3170_v28 = vunpack.i.h.bf16 %v3168_v26  ;;  %v3169_v31 = vunpack.i.l.bf16 %v3168_v26  ;;  %v3165_v32 = vunpack.i.h.bf16 %v3163_v27  ;;  %v3164_v24 = vunpack.i.l.bf16 %v3163_v27 }
 0x1b6   : > { %1750 = vst.msk [vmem:[#allocation2 + $0x37] sm:$0xfe] %vm1734_vm5, %v3169_v31  ;;  %1748 = vst.msk [vmem:[#allocation2 + $0x2f] sm:$0xfe] %vm1734_vm5, %v3164_v24 }
 0x1b7   : > { %1751 = vst.msk [vmem:[#allocation2 + $0x3f] sm:$0x1] %vm1736_vm6, %v3170_v28  ;;  %1749 = vst.msk [vmem:[#allocation2 + $0x37] sm:$0x1] %vm1736_vm6, %v3165_v32  ;;  %v3178_v34 = vpop.permute.xlu1 %3177  ;;  %v3173_v36 = vpop.permute.xlu0 %3172 }
 0x1b8   : > { %v3180_v17 = vunpack.i.h.bf16 %v3178_v34  ;;  %v3179_v37 = vunpack.i.l.bf16 %v3178_v34  ;;  %v3175_v40 = vunpack.i.h.bf16 %v3173_v36  ;;  %v3174_v56 = vunpack.i.l.bf16 %v3173_v36 }
 0x1ba   : > { %1804 = vst.msk [vmem:[#allocation2 + $0x6] sm:$0xfc] %vm1800_vm7, %v3179_v37  ;;  %1801 = vst.msk [vmem:[#allocation2 - $0x2] sm:$0xfc] %vm1800_vm7, %v3174_v56 }
 0x1bb   : > { %1805 = vst.msk [vmem:[#allocation2 + $0xe] sm:$0x3] %vm1802_vm8, %v3180_v17  ;;  %1803 = vst.msk [vmem:[#allocation2 + $0x6] sm:$0x3] %vm1802_vm8, %v3175_v40  ;;  %v3188_v33 = vpop.permute.xlu1 %3187  ;;  %v3183_v55 = vpop.permute.xlu0 %3182 }
 0x1bc   : > { %v3190_v58 = vunpack.i.h.bf16 %v3188_v33  ;;  %v3189_v43 = vunpack.i.l.bf16 %v3188_v33  ;;  %v3185_v25 = vunpack.i.h.bf16 %v3183_v55  ;;  %v3184_v29 = vunpack.i.l.bf16 %v3183_v55 }
 0x1be   : > { %1812 = vst.msk [vmem:[#allocation2 + $0x26] sm:$0xfc] %vm1800_vm7, %v3189_v43  ;;  %1810 = vst.msk [vmem:[#allocation2 + $0x1e] sm:$0xfc] %vm1800_vm7, %v3184_v29 }
 0x1bf   : > { %1813 = vst.msk [vmem:[#allocation2 + $0x2e] sm:$0x3] %vm1802_vm8, %v3190_v58  ;;  %1811 = vst.msk [vmem:[#allocation2 + $0x26] sm:$0x3] %vm1802_vm8, %v3185_v25  ;;  %v3198_v30 = vpop.permute.xlu1 %3197  ;;  %v3193_v51 = vpop.permute.xlu0 %3192 }
 0x1c0   : > { %v3200_v46 = vunpack.i.h.bf16 %v3198_v30  ;;  %v3199_v45 = vunpack.i.l.bf16 %v3198_v30  ;;  %v3195_v52 = vunpack.i.h.bf16 %v3193_v51  ;;  %v3194_v63 = vunpack.i.l.bf16 %v3193_v51 }
 0x1c2   : > { %1808 = vst.msk [vmem:[#allocation2 + $0x16] sm:$0xfc] %vm1800_vm7, %v3199_v45  ;;  %1806 = vst.msk [vmem:[#allocation2 + $0xe] sm:$0xfc] %vm1800_vm7, %v3194_v63 }
 0x1c3   : > { %1809 = vst.msk [vmem:[#allocation2 + $0x1e] sm:$0x3] %vm1802_vm8, %v3200_v46  ;;  %1807 = vst.msk [vmem:[#allocation2 + $0x16] sm:$0x3] %vm1802_vm8, %v3195_v52  ;;  %v3208_v35 = vpop.permute.xlu1 %3207  ;;  %v3203_v62 = vpop.permute.xlu0 %3202 }
 0x1c4   : > { %v3210_v47 = vunpack.i.h.bf16 %v3208_v35  ;;  %v3209_v2 = vunpack.i.l.bf16 %v3208_v35  ;;  %v3205_v48 = vunpack.i.h.bf16 %v3203_v62  ;;  %v3204_v61 = vunpack.i.l.bf16 %v3203_v62 }
 0x1c6   : > { %1816 = vst.msk [vmem:[#allocation2 + $0x36] sm:$0xfc] %vm1800_vm7, %v3209_v2  ;;  %1814 = vst.msk [vmem:[#allocation2 + $0x2e] sm:$0xfc] %vm1800_vm7, %v3204_v61 }
 0x1c7   : > { %1817 = vst.msk [vmem:[#allocation2 + $0x3e] sm:$0x3] %vm1802_vm8, %v3210_v47  ;;  %1815 = vst.msk [vmem:[#allocation2 + $0x36] sm:$0x3] %vm1802_vm8, %v3205_v48  ;;  %v3218_v49 = vpop.permute.xlu1 %3217  ;;  %v3213_v50 = vpop.permute.xlu0 %3212 }
 0x1c8   : > { %v3220_v44 = vunpack.i.h.bf16 %v3218_v49  ;;  %v3219_v59 = vunpack.i.l.bf16 %v3218_v49  ;;  %v3215_v60 = vunpack.i.h.bf16 %v3213_v50  ;;  %v3214_v41 = vunpack.i.l.bf16 %v3213_v50 }
 0x1ca   : > { %1845 = vst.msk [vmem:[#allocation2 + $0x8] sm:$0xff] %vm1843_vm9, %v3215_v60  ;;  %1844 = vst.msk [vmem:[#allocation2] sm:$0xff] %vm1843_vm9, %v3214_v41 }
 0x1cb   : > { %1848 = vst.msk [vmem:[#allocation2 + $0x20] sm:$0xff] %vm1843_vm9, %v3219_v59  ;;  %1849 = vst.msk [vmem:[#allocation2 + $0x28] sm:$0xff] %vm1843_vm9, %v3220_v44  ;;  %v3228_v42 = vpop.permute.xlu1 %3227  ;;  %v3223_v6 = vpop.permute.xlu0 %3222 }
 0x1cc   : > { %v3230_v57 = vunpack.i.h.bf16 %v3228_v42  ;;  %v3229_v54 = vunpack.i.l.bf16 %v3228_v42  ;;  %v3225_v0 = vunpack.i.h.bf16 %v3223_v6  ;;  %v3224_v10 = vunpack.i.l.bf16 %v3223_v6 }
 0x1ce   : > { %1846 = vst.msk [vmem:[#allocation2 + $0x10] sm:$0xff] %vm1843_vm9, %v3224_v10  ;;  %1847 = vst.msk [vmem:[#allocation2 + $0x18] sm:$0xff] %vm1843_vm9, %v3225_v0 }
 0x1cf   : > { %1850 = vst.msk [vmem:[#allocation2 + $0x30] sm:$0xff] %vm1843_vm9, %v3229_v54  ;;  %1851 = vst.msk [vmem:[#allocation2 + $0x38] sm:$0xff] %vm1843_vm9, %v3230_v57  ;;  %v3238_v11 = vpop.permute.xlu1 %3237  ;;  %v3233_v3 = vpop.permute.xlu0 %3232  ;;  %v2298_v57 = vld [vmem:[%s4392_s4] ss:$0 sm:$0xff] }
 0x1d0   : > { %v3240_v38 = vunpack.i.h.bf16 %v3238_v11  ;;  %v3239_v39 = vunpack.i.l.bf16 %v3238_v11  ;;  %v3235_v4 = vunpack.i.h.bf16 %v3233_v3  ;;  %v3234_v13 = vunpack.i.l.bf16 %v3233_v3 }
 0x1d2   : > { %1905 = vst.msk [vmem:[#allocation2 + $0x7] sm:$0xfe] %vm1901_vm10, %v3239_v39  ;;  %1902 = vst.msk [vmem:[#allocation2 - $0x1] sm:$0xfe] %vm1901_vm10, %v3234_v13 }
 0x1d3   : > { %1906 = vst.msk [vmem:[#allocation2 + $0xf] sm:$0x1] %vm1903_vm11, %v3240_v38  ;;  %1904 = vst.msk [vmem:[#allocation2 + $0x7] sm:$0x1] %vm1903_vm11, %v3235_v4  ;;  %v3248_v1 = vpop.permute.xlu1 %3247  ;;  %v3243_v5 = vpop.permute.xlu0 %3242 }
 0x1d4   : > { %v3250_v20 = vunpack.i.h.bf16 %v3248_v1  ;;  %v3249_v7 = vunpack.i.l.bf16 %v3248_v1  ;;  %v3245_v8 = vunpack.i.h.bf16 %v3243_v5  ;;  %v3244_v9 = vunpack.i.l.bf16 %v3243_v5 }
 0x1d6   : > { %1913 = vst.msk [vmem:[#allocation2 + $0x27] sm:$0xfe] %vm1901_vm10, %v3249_v7  ;;  %1911 = vst.msk [vmem:[#allocation2 + $0x1f] sm:$0xfe] %vm1901_vm10, %v3244_v9 }
 0x1d7   : > { %1914 = vst.msk [vmem:[#allocation2 + $0x2f] sm:$0x1] %vm1903_vm11, %v3250_v20  ;;  %1912 = vst.msk [vmem:[#allocation2 + $0x27] sm:$0x1] %vm1903_vm11, %v3245_v8  ;;  %v3258_v12 = vpop.permute.xlu1 %3257  ;;  %v3253_v53 = vpop.permute.xlu0 %3252 }
 0x1d8   : > { %v3260_v14 = vunpack.i.h.bf16 %v3258_v12  ;;  %v3259_v15 = vunpack.i.l.bf16 %v3258_v12  ;;  %v3255_v16 = vunpack.i.h.bf16 %v3253_v53  ;;  %v3254_v18 = vunpack.i.l.bf16 %v3253_v53 }
 0x1da   : > { %1909 = vst.msk [vmem:[#allocation2 + $0x17] sm:$0xfe] %vm1901_vm10, %v3259_v15  ;;  %1907 = vst.msk [vmem:[#allocation2 + $0xf] sm:$0xfe] %vm1901_vm10, %v3254_v18 }
 0x1db   : > { %1910 = vst.msk [vmem:[#allocation2 + $0x1f] sm:$0x1] %vm1903_vm11, %v3260_v14  ;;  %1908 = vst.msk [vmem:[#allocation2 + $0x17] sm:$0x1] %vm1903_vm11, %v3255_v16  ;;  %v3268_v19 = vpop.permute.xlu1 %3267  ;;  %v3263_v21 = vpop.permute.xlu0 %3262 }
 0x1dc   : > { %v3270_v22 = vunpack.i.h.bf16 %v3268_v19  ;;  %v3269_v23 = vunpack.i.l.bf16 %v3268_v19  ;;  %v3265_v26 = vunpack.i.h.bf16 %v3263_v21  ;;  %v3264_v27 = vunpack.i.l.bf16 %v3263_v21 }
 0x1de   : > { %1917 = vst.msk [vmem:[#allocation2 + $0x37] sm:$0xfe] %vm1901_vm10, %v3269_v23  ;;  %1915 = vst.msk [vmem:[#allocation2 + $0x2f] sm:$0xfe] %vm1901_vm10, %v3264_v27 }
 0x1df   : > { %1918 = vst.msk [vmem:[#allocation2 + $0x3f] sm:$0x1] %vm1903_vm11, %v3270_v22  ;;  %1916 = vst.msk [vmem:[#allocation2 + $0x37] sm:$0x1] %vm1903_vm11, %v3265_v26  ;;  %v3278_v28 = vpop.permute.xlu1 %3277  ;;  %v3273_v31 = vpop.permute.xlu0 %3272 }
 0x1e0   : > { %v3280_v32 = vunpack.i.h.bf16 %v3278_v28  ;;  %v3279_v24 = vunpack.i.l.bf16 %v3278_v28  ;;  %v3275_v34 = vunpack.i.h.bf16 %v3273_v31  ;;  %v3274_v36 = vunpack.i.l.bf16 %v3273_v31 }
 0x1e2   : > { %1971 = vst.msk [vmem:[#allocation2 + $0x6] sm:$0xfc] %vm1967_vm12, %v3279_v24  ;;  %1968 = vst.msk [vmem:[#allocation2 - $0x2] sm:$0xfc] %vm1967_vm12, %v3274_v36 }
 0x1e3   : > { %1972 = vst.msk [vmem:[#allocation2 + $0xe] sm:$0x3] %vm1969_vm13, %v3280_v32  ;;  %1970 = vst.msk [vmem:[#allocation2 + $0x6] sm:$0x3] %vm1969_vm13, %v3275_v34  ;;  %v3288_v17 = vpop.permute.xlu1 %3287  ;;  %v3283_v37 = vpop.permute.xlu0 %3282 }
 0x1e4   : > { %v3290_v40 = vunpack.i.h.bf16 %v3288_v17  ;;  %v3289_v56 = vunpack.i.l.bf16 %v3288_v17  ;;  %v3285_v33 = vunpack.i.h.bf16 %v3283_v37  ;;  %v3284_v55 = vunpack.i.l.bf16 %v3283_v37 }
 0x1e6   : > { %1979 = vst.msk [vmem:[#allocation2 + $0x26] sm:$0xfc] %vm1967_vm12, %v3289_v56  ;;  %1977 = vst.msk [vmem:[#allocation2 + $0x1e] sm:$0xfc] %vm1967_vm12, %v3284_v55 }
 0x1e7   : > { %1980 = vst.msk [vmem:[#allocation2 + $0x2e] sm:$0x3] %vm1969_vm13, %v3290_v40  ;;  %1978 = vst.msk [vmem:[#allocation2 + $0x26] sm:$0x3] %vm1969_vm13, %v3285_v33  ;;  %v3298_v58 = vpop.permute.xlu1 %3297  ;;  %v3293_v43 = vpop.permute.xlu0 %3292 }
 0x1e8   : > { %v3300_v25 = vunpack.i.h.bf16 %v3298_v58  ;;  %v3299_v29 = vunpack.i.l.bf16 %v3298_v58  ;;  %v3295_v30 = vunpack.i.h.bf16 %v3293_v43  ;;  %v3294_v51 = vunpack.i.l.bf16 %v3293_v43 }
 0x1ea   : > { %v1985_v46 = vld [vmem:[#allocation2] sm:$0xff]  ;;  %v1986_v45 = vld [vmem:[#allocation2 + $0x8] sm:$0xff]  ;;  %1975 = vst.msk [vmem:[#allocation2 + $0x16] sm:$0xfc] %vm1967_vm12, %v3299_v29  ;;  %1973 = vst.msk [vmem:[#allocation2 + $0xe] sm:$0xfc] %vm1967_vm12, %v3294_v51 }
 0x1eb   : > { %1976 = vst.msk [vmem:[#allocation2 + $0x1e] sm:$0x3] %vm1969_vm13, %v3300_v25  ;;  %1974 = vst.msk [vmem:[#allocation2 + $0x16] sm:$0x3] %vm1969_vm13, %v3295_v30  ;;  %v1993_v52 = vpack.c.bf16 %v1986_v45, %v1985_v46  ;;  %v3308_v63 = vpop.permute.xlu1 %3307  ;;  %v3303_v35 = vpop.permute.xlu0 %3302 }
 0x1ec   : > { %v3310_v62 = vunpack.i.h.bf16 %v3308_v63  ;;  %v3309_v47 = vunpack.i.l.bf16 %v3308_v63  ;;  %v3305_v2 = vunpack.i.h.bf16 %v3303_v35  ;;  %v3304_v48 = vunpack.i.l.bf16 %v3303_v35 }
 0x1ed   : > { %2337 = vmatprep.mubr.msk.bf16.mxu0 %vm2059_vm14, %v1993_v52 }
 0x1ee   : > { %v1989_v61 = vld [vmem:[#allocation2 + $0x20] sm:$0xff]  ;;  %v1990_v49 = vld [vmem:[#allocation2 + $0x28] sm:$0xff]  ;;  %1983 = vst.msk [vmem:[#allocation2 + $0x36] sm:$0xfc] %vm1967_vm12, %v3309_v47  ;;  %1981 = vst.msk [vmem:[#allocation2 + $0x2e] sm:$0xfc] %vm1967_vm12, %v3304_v48 }
 0x1ef   : > { %1984 = vst.msk [vmem:[#allocation2 + $0x3e] sm:$0x3] %vm1969_vm13, %v3310_v62  ;;  %1982 = vst.msk [vmem:[#allocation2 + $0x36] sm:$0x3] %vm1969_vm13, %v3305_v2  ;;  %v1995_v50 = vpack.c.bf16 %v1990_v49, %v1989_v61 }
 0x1f1   : > { %2341 = vmatprep.mubr.msk.bf16.mxu1 %vm2059_vm14, %v1995_v50 }
 0x1f2   : > { %v1987_v44 = vld [vmem:[#allocation2 + $0x10] sm:$0xff]  ;;  %v1988_v59 = vld [vmem:[#allocation2 + $0x18] sm:$0xff] }
 0x1f3   : > { %v1994_v60 = vpack.c.bf16 %v1988_v59, %v1987_v44 }
 0x1f5   : > { %2338 = vmatmul.mubr.msk.bf16.vlgmr.msra.gmra.mrb[0].mxu0 %vm2059_vm14, %v1994_v60 }
 0x1f6   : > { %v1991_v41 = vld [vmem:[#allocation2 + $0x30] sm:$0xff]  ;;  %v1992_v42 = vld [vmem:[#allocation2 + $0x38] sm:$0xff] }
 0x1f7   : > { %v1996_v6 = vpack.c.bf16 %v1992_v42, %v1991_v41 }
 0x1f9   : > { %2342 = vmatmul.mubr.msk.bf16.vlgmr.msra.gmra.mrb[0].mxu1 %vm2059_vm14, %v1996_v6 }
 0x2c8   : > { %v2339_v54 = vpop.f32.mrb[0].mxu0 }
 0x2c9   : > { %v2119_v0 = vadd.f32 %v2339_v54, %v2298_v57  ;;  %v2110_v10 = vpop.f32.mrb[1].mxu0 }
 0x2ca   : > { %v2111_v11 = vadd.f32 %v2298_v57, %v2110_v10  ;;  %v2340_v3 = vpop.f32.mrb[2].mxu0 }
 0x2cb   : > { %2144 = vst.msk [vmem:[%s342_s25 + $0x10] sm:$0xff] %vm2141_vm15, %v2119_v0  ;;  %v2122_v38 = vadd.f32 %v2340_v3, %v2298_v57  ;;  %v2113_v39 = vpop.f32.mrb[3].mxu0 }
 0x2cc   : > { %2142 = vst.msk [vmem:[%s342_s25] sm:$0xff] %vm2141_vm15, %v2111_v11  ;;  %v2114_v4 = vadd.f32 %v2298_v57, %v2113_v39  ;;  %v2343_v13 = vpop.f32.mrb[0].mxu1 }
 0x2cd   : > { %2145 = vst.msk [vmem:[%s342_s25 + $0x18] sm:$0xff] %vm2141_vm15, %v2122_v38  ;;  %v2135_v1 = vadd.f32 %v2343_v13, %v2298_v57  ;;  %v2126_v5 = vpop.f32.mrb[1].mxu1 }
 0x2ce   : > { %2143 = vst.msk [vmem:[%s342_s25 + $0x8] sm:$0xff] %vm2141_vm15, %v2114_v4  ;;  %v2127_v20 = vadd.f32 %v2298_v57, %v2126_v5  ;;  %v2344_v7 = vpop.f32.mrb[2].mxu1 }
 0x2cf   : > { %2148 = vst.msk [vmem:[%s342_s25 + $0x30] sm:$0xff] %vm2141_vm15, %v2135_v1  ;;  %v2138_v8 = vadd.f32 %v2344_v7, %v2298_v57  ;;  %v2129_v9 = vpop.f32.mrb[3].mxu1 }
 0x2d0   : > { %2146 = vst.msk [vmem:[%s342_s25 + $0x20] sm:$0xff] %vm2141_vm15, %v2127_v20  ;;  %v2130_v12 = vadd.f32 %v2298_v57, %v2129_v9 }
 0x2d1   : > { %2149 = vst.msk [vmem:[%s342_s25 + $0x38] sm:$0xff] %vm2141_vm15, %v2138_v8 }
 0x2d2   : > { %2147 = vst.msk [vmem:[%s342_s25 + $0x28] sm:$0xff] %vm2141_vm15, %v2130_v12 }
 0x2d3 PF: > { %s15_s22 = sadd.s32 1, %s3356_s22   ;;  %s4395_s18 = smov %s3348_s20 }
 0x2d4   : > { %p12_p10 = scmp.ge.s32.totalorder %s15_s22, 10   ;;  %s4396_s19 = smov %s3352_s21 }
 0x2d5   : > { %s4397_s20 = smov %s4400_s23  ;;  %s4398_s21 = smov %s4404_s24 }
 0x2d6   :  { %14 = sbr.rel (!%p12_p10) target bundleno = 3 (0x3), region = 76 }

</bundles_post_ra>
